<compile_context>
chip_gen: v5e
topology: v5e:2x2
jax: 0.10.0
libtpu: 0.0.40
codegen_flags: <defaults>
</compile_context>

<pallas_src>
import functools
import math

import jax
import jax.numpy as jnp
from jax import lax
from jax.experimental import pallas as pl
from jax.experimental.pallas import tpu as pltpu


# ---------------------------------------------------------------------------
# In-kernel value helpers
# ---------------------------------------------------------------------------
def _layernorm(x, g, b, eps=1e-5):
    mu = jnp.mean(x, axis=-1, keepdims=True)
    xc = x - mu
    var = jnp.mean(xc * xc, axis=-1, keepdims=True)
    return xc * lax.rsqrt(var + eps) * g + b


# ---------------------------------------------------------------------------
# Single fused kernel: init_encode -> encoder stack -> classifier head
# ---------------------------------------------------------------------------
def _classifier_kernel(xe_ref, st_ref, mask_ref, pe_ref, ad_ref,
                       w_emb_ref, w_time_ref, w_ti_ref, init_b_ref,
                       qkv_w_ref, qkv_b_ref, out_w_ref, out_b_ref,
                       ln1_g_ref, ln1_b_ref, ff1_w_ref, ff1_b_ref,
                       ff2_w_ref, ff2_b_ref, ln2_g_ref, ln2_b_ref,
                       lout_w_ref, lout_b_ref, l1_wa_ref, l1_wb_ref,
                       l1_b_ref, bn_s_ref, bn_t_ref, l2_w_ref, l2_b_ref,
                       dec_w_ref, dec_b_ref, o_ref, *, nhead):
    f32 = jnp.float32
    R, E = xe_ref.shape          # rows are batch-major: r = b*S + s
    S, B = st_ref.shape
    H = nhead
    Dh = E // H
    L = qkv_w_ref.shape[0]
    scale = 1.0 / math.sqrt(Dh)
    neg_inf = float("-inf")

    # ---------- prologue: time interval + init_encode + positional enc ----
    stT = st_ref[...]                                   # (S, B) raw src_time
    t_relu = jnp.maximum(stT, 0.0)

    ii = lax.broadcasted_iota(jnp.int32, (S, S), 0)
    jj = lax.broadcasted_iota(jnp.int32, (S, S), 1)
    lower = jnp.where(jj <= ii, 1.0, 0.0).astype(f32)   # lower @ x == col cumsum

    pos_sb = jnp.dot(lower, t_relu, preferred_element_type=f32)      # (S, B)

    # Transpose pos_sb on the MXU (identity contraction) -> (B, S); avoids an
    # XLU transpose and lets us pass only ONE layout of src_time.
    bi = lax.broadcasted_iota(jnp.int32, (B, B), 0)
    bj = lax.broadcasted_iota(jnp.int32, (B, B), 1)
    eye_b = jnp.where(bi == bj, 1.0, 0.0).astype(f32)
    pos_bs = lax.dot_general(eye_b, pos_sb, (((1,), (1,)), ((), ())),
                             preferred_element_type=f32)             # (B, S)

    ti_blocks = []
    time_cols = []
    for b in range(B):                                  # tiny static unroll
        col_b = pos_sb[:, b:b + 1]                      # (S, 1)
        row_b = pos_bs[b:b + 1, :]                      # (1, S)
        ti_blocks.append(jnp.abs(col_b - row_b))        # (S, S)
        time_cols.append(stT[:, b:b + 1])               # (S, 1)
    ti_stack = jnp.concatenate(ti_blocks, axis=0)       # (R, S)
    time_col = jnp.concatenate(time_cols, axis=0)       # (R, 1)
    pe_rows = jnp.concatenate([pe_ref[...]] * B, axis=0)  # (R, E)

    # init_encode on concat([emb, time, time_interval]) split by input group:
    x = (jnp.dot(xe_ref[...], w_emb_ref[...], preferred_element_type=f32)
         + jnp.dot(ti_stack, w_ti_ref[...], preferred_element_type=f32)
         + time_col * w_time_ref[...]
         + init_b_ref[...]
         + pe_rows)                                      # (R, E)

    # ---------- block-diagonal (R, R) additive mask (causal + cross-batch) -
    mask = mask_ref[...]                                 # (S, S)
    ninf_blk = jnp.full((S, S), neg_inf, f32)
    mask_rows = []
    for bi_ in range(B):
        mask_rows.append(jnp.concatenate(
            [mask if bj_ == bi_ else ninf_blk for bj_ in range(B)], axis=1))
    mask_full = jnp.concatenate(mask_rows, axis=0)       # (R, R)

    # ---------- transformer encoder stack (post-LN layers, static unroll) --
    for l in range(L):
        qkv = (jnp.dot(x, qkv_w_ref[l], preferred_element_type=f32)
               + qkv_b_ref[l])                           # (R, 3E)
        q = qkv[:, 0:E]
        k = qkv[:, E:2 * E]
        v = qkv[:, 2 * E:3 * E]

        head_outs = []
        for h in range(H):                               # per-head, all batches
            cols = slice(h * Dh, (h + 1) * Dh)
            qh = q[:, cols]
            kh = k[:, cols]
            vh = v[:, cols]
            s = lax.dot_general(qh, kh, (((1,), (1,)), ((), ())),
                                preferred_element_type=f32) * scale  # (R, R)
            s = s + mask_full
            s = s - jnp.max(s, axis=-1, keepdims=True)
            p = jnp.exp(s)
            p = p * pl.reciprocal(jnp.sum(p, axis=-1, keepdims=True),
                                  approx=True)
            head_outs.append(jnp.dot(p, vh, preferred_element_type=f32))
        a = jnp.concatenate(head_outs, axis=-1)          # (R, E), in registers
        a = jnp.dot(a, out_w_ref[l], preferred_element_type=f32) + out_b_ref[l]
        x = _layernorm(x + a, ln1_g_ref[l], ln1_b_ref[l])            # norm1

        f = jnp.maximum(jnp.dot(x, ff1_w_ref[l], preferred_element_type=f32)
                        + ff1_b_ref[l], 0.0)
        f = jnp.dot(f, ff2_w_ref[l], preferred_element_type=f32) + ff2_b_ref[l]
        x = _layernorm(x + f, ln2_g_ref[l], ln2_b_ref[l])            # norm2

    # ---------- classifier head (last seq position per batch, static) ------
    xlast = jnp.concatenate(
        [x[(b + 1) * S - 1:(b + 1) * S, :] for b in range(B)], axis=0)  # (B, E)

    lo = (jnp.dot(xlast, lout_w_ref[...], preferred_element_type=f32)
          + lout_b_ref[...])                             # (B, A)
    # concat([lo, act_dist]) @ l1_w == lo @ l1_w[:A] + act_dist @ l1_w[A:]
    h1 = (jnp.dot(lo, l1_wa_ref[...], preferred_element_type=f32)
          + jnp.dot(ad_ref[...], l1_wb_ref[...], preferred_element_type=f32)
          + l1_b_ref[...])
    h1 = jnp.maximum(h1, 0.0)
    h1 = h1 * bn_s_ref[...] + bn_t_ref[...]              # BatchNorm1d (eval)
    h2 = jnp.maximum(jnp.dot(h1, l2_w_ref[...], preferred_element_type=f32)
                     + l2_b_ref[...], 0.0)
    h2 = h2 * bn_s_ref[...] + bn_t_ref[...]              # same fresh-init BN
    z = jnp.dot(h2, dec_w_ref[...], preferred_element_type=f32) + dec_b_ref[...]
    o_ref[...] = pl.reciprocal(1.0 + jnp.exp(-z), approx=True).astype(o_ref.dtype)


# ---------------------------------------------------------------------------
# Parameter init (matches the fresh-initialized PyTorch module at eval time)
# ---------------------------------------------------------------------------
def init_params(key, *, dim_out, ntoken, ninp, nhead, nhid, nlayers,
                padding_index, ndsize, nsep, max_len=64):
    del nhead  # head split is shape-only
    keys = iter(jax.random.split(key, 32))

    def u(shape, scale=0.1):
        return jax.random.uniform(next(keys), shape, jnp.float32, -scale, scale)

    p = {}
    emb = u((ntoken, ninp))
    p["emb"] = emb.at[padding_index].set(0.0)          # padding_idx row zeroed

    # init_encode weight pre-transposed to (in, out) and split by input group
    init_w = u((ninp + 1 + nsep, ninp))
    p["init_w_emb"] = init_w[:ninp]                    # (E, E)
    p["init_w_time"] = init_w[ninp:ninp + 1]           # (1, E)
    p["init_w_ti"] = init_w[ninp + 1:]                 # (nsep, E)
    p["init_b"] = u((1, ninp))

    L = nlayers                                        # stacked per-layer weights
    p["qkv_w"] = u((L, ninp, 3 * ninp)); p["qkv_b"] = u((L, 1, 3 * ninp))
    p["out_w"] = u((L, ninp, ninp));     p["out_b"] = u((L, 1, ninp))
    p["ln1_g"] = jnp.ones((L, 1, ninp)); p["ln1_b"] = jnp.zeros((L, 1, ninp))
    p["ff1_w"] = u((L, ninp, nhid));     p["ff1_b"] = u((L, 1, nhid))
    p["ff2_w"] = u((L, nhid, ninp));     p["ff2_b"] = u((L, 1, ninp))
    p["ln2_g"] = jnp.ones((L, 1, ninp)); p["ln2_b"] = jnp.zeros((L, 1, ninp))

    A = padding_index + 1
    p["lout_w"] = u((ninp, A)); p["lout_b"] = u((1, A))
    l1_w = u((2 * A, ndsize))
    p["l1_wa"] = l1_w[:A]; p["l1_wb"] = l1_w[A:]; p["l1_b"] = u((1, ndsize))
    # BatchNorm1d (eval, fresh init): gamma=1, beta=0, mean=0, var=1 -> folded
    eps = 1e-5
    p["bn_scale"] = jnp.ones((1, ndsize)) / jnp.sqrt(1.0 + eps)
    p["bn_shift"] = jnp.zeros((1, ndsize))
    p["l2_w"] = u((ndsize, ndsize)); p["l2_b"] = u((1, ndsize))
    p["dec_w"] = u((ndsize, dim_out)); p["dec_b"] = jnp.zeros((1, dim_out))

    # PositionalEncoding table (max_len, ninp)
    pos = jnp.arange(max_len, dtype=jnp.float32)[:, None]
    div = jnp.exp(jnp.arange(0, ninp, 2, dtype=jnp.float32)
                  * (-math.log(10000.0) / ninp))
    pe = jnp.zeros((max_len, ninp), jnp.float32)
    pe = pe.at[:, 0::2].set(jnp.sin(pos * div))
    pe = pe.at[:, 1::2].set(jnp.cos(pos * div))
    p["pe"] = pe
    return p


# ---------------------------------------------------------------------------
# Forward: one pallas_call; only XLA glue is the embedding gather
# ---------------------------------------------------------------------------
def _full_spec(shape):
    nd = len(shape)
    return pl.BlockSpec(shape, lambda *_, nd=nd: (0,) * nd)


def classifier_forward(p, src, src_time, src_mask, act_dist, *, ninp, nhead):
    S, B = src.shape
    E = ninp
    R = B * S

    # XLA glue: embedding gather + scale, batch-major rows (r = b*S + s).
    # TODO(synk): embedding gather stays in XLA (no clean static-index Pallas path).
    xe = (jnp.transpose(p["emb"][src], (1, 0, 2)) * math.sqrt(E)).reshape(R, E)

    args = (xe, src_time, src_mask, p["pe"][:S], act_dist,
            p["init_w_emb"], p["init_w_time"], p["init_w_ti"], p["init_b"],
            p["qkv_w"], p["qkv_b"], p["out_w"], p["out_b"],
            p["ln1_g"], p["ln1_b"], p["ff1_w"], p["ff1_b"],
            p["ff2_w"], p["ff2_b"], p["ln2_g"], p["ln2_b"],
            p["lout_w"], p["lout_b"], p["l1_wa"], p["l1_wb"], p["l1_b"],
            p["bn_scale"], p["bn_shift"], p["l2_w"], p["l2_b"],
            p["dec_w"], p["dec_b"])

    L = p["qkv_w"].shape[0]
    nhid = p["ff1_w"].shape[2]
    A = act_dist.shape[1]
    nd = p["l2_w"].shape[0]
    dim_out = p["dec_w"].shape[1]
    Dh = E // nhead

    flops = (2 * R * E * E + 2 * R * S * E + 2 * S * S * B          # prologue
             + L * (2 * R * E * 3 * E + 4 * nhead * R * R * Dh      # attention
                    + 2 * R * E * E + 4 * R * E * nhid)             # proj + FFN
             + 2 * B * (E * A + 2 * A * nd + nd * nd + nd * dim_out))  # head
    transcendentals = L * nhead * R * R + B * dim_out
    bytes_accessed = int(sum(int(a.size) * a.dtype.itemsize for a in args)
                         + B * dim_out * 4)

    out_shape = jax.ShapeDtypeStruct((B, dim_out), jnp.float32)
    return pl.pallas_call(
        functools.partial(_classifier_kernel, nhead=nhead),
        out_shape=out_shape,
        grid=(1,),
        in_specs=[_full_spec(a.shape) for a in args],
        out_specs=_full_spec(out_shape.shape),
        compiler_params=pltpu.CompilerParams(
            dimension_semantics=("arbitrary",),
            vmem_limit_bytes=32 * 1024 * 1024),
        cost_estimate=pl.CostEstimate(flops=int(flops),
                                      transcendentals=int(transcendentals),
                                      bytes_accessed=bytes_accessed),
    )(*args)


# ---------------------------------------------------------------------------
if __name__ == "__main__":
    # Small, self-consistent hyper-parameters
    dim_out, ntoken, ninp, nhead, nhid, nlayers = 4, 50, 32, 2, 64, 2
    padding_index, ndsize = 9, 16
    S, B = 8, 2
    nsep = S                      # time_interval last dim == seq length

    key = jax.random.PRNGKey(0)
    pkey, k1, k2, k3 = jax.random.split(key, 4)
    params = init_params(pkey, dim_out=dim_out, ntoken=ntoken, ninp=ninp,
                         nhead=nhead, nhid=nhid, nlayers=nlayers,
                         padding_index=padding_index, ndsize=ndsize, nsep=nsep)

    src = jax.random.randint(k1, (S, B), 0, ntoken, dtype=jnp.int32)
    src_time = jax.random.uniform(k2, (S, B), jnp.float32, 0.0, 1.0)
    act_dist = jax.random.uniform(k3, (B, padding_index + 1), jnp.float32)
    # generate_square_subsequent_mask: 0 on/below diagonal, -inf above
    src_mask = jnp.where(jnp.tril(jnp.ones((S, S), dtype=bool)),
                         0.0, -jnp.inf).astype(jnp.float32)

    fwd = jax.jit(functools.partial(classifier_forward, ninp=ninp, nhead=nhead))
    y = fwd(params, src, src_time, src_mask, act_dist)
    jax.block_until_ready(y)
    assert y.shape == (B, dim_out) and bool(jnp.all(jnp.isfinite(y)))
    print("KERNEL_OK")
</pallas_src>

<mosaic_0001>
module attributes {stable_mosaic.version = 11 : i64} {
  func.func @_classifier_kernel(%arg0: i32, %arg1: memref<16x32xf32, #tpu.memory_space<vmem>>, %arg2: memref<8x2xf32, #tpu.memory_space<vmem>>, %arg3: memref<8x8xf32, #tpu.memory_space<vmem>>, %arg4: memref<8x32xf32, #tpu.memory_space<vmem>>, %arg5: memref<2x10xf32, #tpu.memory_space<vmem>>, %arg6: memref<32x32xf32, #tpu.memory_space<vmem>>, %arg7: memref<1x32xf32, #tpu.memory_space<vmem>>, %arg8: memref<8x32xf32, #tpu.memory_space<vmem>>, %arg9: memref<1x32xf32, #tpu.memory_space<vmem>>, %arg10: memref<2x32x96xf32, #tpu.memory_space<vmem>>, %arg11: memref<2x1x96xf32, #tpu.memory_space<vmem>>, %arg12: memref<2x32x32xf32, #tpu.memory_space<vmem>>, %arg13: memref<2x1x32xf32, #tpu.memory_space<vmem>>, %arg14: memref<2x1x32xf32, #tpu.memory_space<vmem>>, %arg15: memref<2x1x32xf32, #tpu.memory_space<vmem>>, %arg16: memref<2x32x64xf32, #tpu.memory_space<vmem>>, %arg17: memref<2x1x64xf32, #tpu.memory_space<vmem>>, %arg18: memref<2x64x32xf32, #tpu.memory_space<vmem>>, %arg19: memref<2x1x32xf32, #tpu.memory_space<vmem>>, %arg20: memref<2x1x32xf32, #tpu.memory_space<vmem>>, %arg21: memref<2x1x32xf32, #tpu.memory_space<vmem>>, %arg22: memref<32x10xf32, #tpu.memory_space<vmem>>, %arg23: memref<1x10xf32, #tpu.memory_space<vmem>>, %arg24: memref<10x16xf32, #tpu.memory_space<vmem>>, %arg25: memref<10x16xf32, #tpu.memory_space<vmem>>, %arg26: memref<1x16xf32, #tpu.memory_space<vmem>>, %arg27: memref<1x16xf32, #tpu.memory_space<vmem>>, %arg28: memref<1x16xf32, #tpu.memory_space<vmem>>, %arg29: memref<16x16xf32, #tpu.memory_space<vmem>>, %arg30: memref<1x16xf32, #tpu.memory_space<vmem>>, %arg31: memref<16x4xf32, #tpu.memory_space<vmem>>, %arg32: memref<1x4xf32, #tpu.memory_space<vmem>>, %arg33: memref<2x4xf32, #tpu.memory_space<vmem>>) attributes {dimension_semantics = [#tpu.dimension_semantics<arbitrary>], iteration_bounds = array<i64: 1>, scalar_prefetch = 0 : i64, scratch_operands = 0 : i64, tpu.core_type = #tpu.core_type<tc>, window_params = [{pipeline_mode = #tpu.pipeline_mode<synchronous>, transform_indices = @transform_0, window_bounds = array<i64: 16, 32>}, {pipeline_mode = #tpu.pipeline_mode<synchronous>, transform_indices = @transform_1, window_bounds = array<i64: 8, 2>}, {pipeline_mode = #tpu.pipeline_mode<synchronous>, transform_indices = @transform_2, window_bounds = array<i64: 8, 8>}, {pipeline_mode = #tpu.pipeline_mode<synchronous>, transform_indices = @transform_3, window_bounds = array<i64: 8, 32>}, {pipeline_mode = #tpu.pipeline_mode<synchronous>, transform_indices = @transform_4, window_bounds = array<i64: 2, 10>}, {pipeline_mode = #tpu.pipeline_mode<synchronous>, transform_indices = @transform_5, window_bounds = array<i64: 32, 32>}, {pipeline_mode = #tpu.pipeline_mode<synchronous>, transform_indices = @transform_6, window_bounds = array<i64: 1, 32>}, {pipeline_mode = #tpu.pipeline_mode<synchronous>, transform_indices = @transform_7, window_bounds = array<i64: 8, 32>}, {pipeline_mode = #tpu.pipeline_mode<synchronous>, transform_indices = @transform_8, window_bounds = array<i64: 1, 32>}, {pipeline_mode = #tpu.pipeline_mode<synchronous>, transform_indices = @transform_9, window_bounds = array<i64: 2, 32, 96>}, {pipeline_mode = #tpu.pipeline_mode<synchronous>, transform_indices = @transform_10, window_bounds = array<i64: 2, 1, 96>}, {pipeline_mode = #tpu.pipeline_mode<synchronous>, transform_indices = @transform_11, window_bounds = array<i64: 2, 32, 32>}, {pipeline_mode = #tpu.pipeline_mode<synchronous>, transform_indices = @transform_12, window_bounds = array<i64: 2, 1, 32>}, {pipeline_mode = #tpu.pipeline_mode<synchronous>, transform_indices = @transform_13, window_bounds = array<i64: 2, 1, 32>}, {pipeline_mode = #tpu.pipeline_mode<synchronous>, transform_indices = @transform_14, window_bounds = array<i64: 2, 1, 32>}, {pipeline_mode = #tpu.pipeline_mode<synchronous>, transform_indices = @transform_15, window_bounds = array<i64: 2, 32, 64>}, {pipeline_mode = #tpu.pipeline_mode<synchronous>, transform_indices = @transform_16, window_bounds = array<i64: 2, 1, 64>}, {pipeline_mode = #tpu.pipeline_mode<synchronous>, transform_indices = @transform_17, window_bounds = array<i64: 2, 64, 32>}, {pipeline_mode = #tpu.pipeline_mode<synchronous>, transform_indices = @transform_18, window_bounds = array<i64: 2, 1, 32>}, {pipeline_mode = #tpu.pipeline_mode<synchronous>, transform_indices = @transform_19, window_bounds = array<i64: 2, 1, 32>}, {pipeline_mode = #tpu.pipeline_mode<synchronous>, transform_indices = @transform_20, window_bounds = array<i64: 2, 1, 32>}, {pipeline_mode = #tpu.pipeline_mode<synchronous>, transform_indices = @transform_21, window_bounds = array<i64: 32, 10>}, {pipeline_mode = #tpu.pipeline_mode<synchronous>, transform_indices = @transform_22, window_bounds = array<i64: 1, 10>}, {pipeline_mode = #tpu.pipeline_mode<synchronous>, transform_indices = @transform_23, window_bounds = array<i64: 10, 16>}, {pipeline_mode = #tpu.pipeline_mode<synchronous>, transform_indices = @transform_24, window_bounds = array<i64: 10, 16>}, {pipeline_mode = #tpu.pipeline_mode<synchronous>, transform_indices = @transform_25, window_bounds = array<i64: 1, 16>}, {pipeline_mode = #tpu.pipeline_mode<synchronous>, transform_indices = @transform_26, window_bounds = array<i64: 1, 16>}, {pipeline_mode = #tpu.pipeline_mode<synchronous>, transform_indices = @transform_27, window_bounds = array<i64: 1, 16>}, {pipeline_mode = #tpu.pipeline_mode<synchronous>, transform_indices = @transform_28, window_bounds = array<i64: 16, 16>}, {pipeline_mode = #tpu.pipeline_mode<synchronous>, transform_indices = @transform_29, window_bounds = array<i64: 1, 16>}, {pipeline_mode = #tpu.pipeline_mode<synchronous>, transform_indices = @transform_30, window_bounds = array<i64: 16, 4>}, {pipeline_mode = #tpu.pipeline_mode<synchronous>, transform_indices = @transform_31, window_bounds = array<i64: 1, 4>}, {pipeline_mode = #tpu.pipeline_mode<synchronous>, transform_indices = @transform_32, window_bounds = array<i64: 2, 4>}]} {
    %c0 = arith.constant 0 : index
    %c0_0 = arith.constant 0 : index
    %0 = vector.load %arg2[%c0, %c0_0] : memref<8x2xf32, #tpu.memory_space<vmem>>, vector<8x2xf32>
    %cst = arith.constant 0.000000e+00 : f32
    %1 = vector.broadcast %cst : f32 to vector<8x2xf32>
    %2 = arith.maximumf %0, %1 : vector<8x2xf32>
    %3 = tpu.iota {dimensions = array<i32: 0>} : vector<8x8xi32>
    %4 = tpu.iota {dimensions = array<i32: 1>} : vector<8x8xi32>
    %5 = arith.cmpi sle, %4, %3 : vector<8x8xi32>
    %cst_1 = arith.constant 1.000000e+00 : f32
    %cst_2 = arith.constant 0.000000e+00 : f32
    %6 = vector.broadcast %cst_1 : f32 to vector<8x8xf32>
    %7 = vector.broadcast %cst_2 : f32 to vector<8x8xf32>
    %8 = arith.select %5, %6, %7 : vector<8x8xi1>, vector<8x8xf32>
    %cst_3 = arith.constant dense<0.000000e+00> : vector<8x2xf32>
    %9 = tpu.matmul %8, %2, %cst_3 {dimension_numbers = #tpu.dot_dimension_numbers<[1], [0], [0], [1], [0, 0, 1, 1], [], []>} : vector<8x8xf32>, vector<8x2xf32>, vector<8x2xf32> -> vector<8x2xf32>
    %10 = tpu.iota {dimensions = array<i32: 0>} : vector<2x2xi32>
    %11 = tpu.iota {dimensions = array<i32: 1>} : vector<2x2xi32>
    %12 = arith.cmpi eq, %10, %11 : vector<2x2xi32>
    %cst_4 = arith.constant 1.000000e+00 : f32
    %cst_5 = arith.constant 0.000000e+00 : f32
    %13 = vector.broadcast %cst_4 : f32 to vector<2x2xf32>
    %14 = vector.broadcast %cst_5 : f32 to vector<2x2xf32>
    %15 = arith.select %12, %13, %14 : vector<2x2xi1>, vector<2x2xf32>
    %cst_6 = arith.constant dense<0.000000e+00> : vector<2x8xf32>
    %16 = tpu.matmul %15, %9, %cst_6 {dimension_numbers = #tpu.dot_dimension_numbers<[1], [1], [0], [0], [0, 0, 1, 0], [], []>} : vector<2x2xf32>, vector<8x2xf32>, vector<2x8xf32> -> vector<2x8xf32>
    %17 = vector.extract_strided_slice %9 {offsets = [0, 0], sizes = [8, 1], strides = [1, 1]} : vector<8x2xf32> to vector<8x1xf32>
    %18 = vector.extract_strided_slice %16 {offsets = [0, 0], sizes = [1, 8], strides = [1, 1]} : vector<2x8xf32> to vector<1x8xf32>
    %19 = vector.broadcast %17 : vector<8x1xf32> to vector<8x8xf32>
    %20 = vector.broadcast %18 : vector<1x8xf32> to vector<8x8xf32>
    %21 = arith.subf %19, %20 : vector<8x8xf32>
    %22 = math.absf %21 : vector<8x8xf32>
    %23 = vector.extract_strided_slice %0 {offsets = [0, 0], sizes = [8, 1], strides = [1, 1]} : vector<8x2xf32> to vector<8x1xf32>
    %24 = vector.extract_strided_slice %9 {offsets = [0, 1], sizes = [8, 1], strides = [1, 1]} : vector<8x2xf32> to vector<8x1xf32>
    %25 = vector.extract_strided_slice %16 {offsets = [1, 0], sizes = [1, 8], strides = [1, 1]} : vector<2x8xf32> to vector<1x8xf32>
    %26 = vector.broadcast %24 : vector<8x1xf32> to vector<8x8xf32>
    %27 = vector.broadcast %25 : vector<1x8xf32> to vector<8x8xf32>
    %28 = arith.subf %26, %27 : vector<8x8xf32>
    %29 = math.absf %28 : vector<8x8xf32>
    %30 = vector.extract_strided_slice %0 {offsets = [0, 1], sizes = [8, 1], strides = [1, 1]} : vector<8x2xf32> to vector<8x1xf32>
    %31 = tpu.concatenate %22, %29 in 0 : vector<8x8xf32>, vector<8x8xf32> -> vector<16x8xf32>
    %32 = tpu.concatenate %23, %30 in 0 : vector<8x1xf32>, vector<8x1xf32> -> vector<16x1xf32>
    %c0_7 = arith.constant 0 : index
    %c0_8 = arith.constant 0 : index
    %33 = vector.load %arg4[%c0_7, %c0_8] : memref<8x32xf32, #tpu.memory_space<vmem>>, vector<8x32xf32>
    %34 = tpu.concatenate %33, %33 in 0 : vector<8x32xf32>, vector<8x32xf32> -> vector<16x32xf32>
    %c0_9 = arith.constant 0 : index
    %c0_10 = arith.constant 0 : index
    %35 = vector.load %arg1[%c0_9, %c0_10] : memref<16x32xf32, #tpu.memory_space<vmem>>, vector<16x32xf32>
    %c0_11 = arith.constant 0 : index
    %c0_12 = arith.constant 0 : index
    %36 = vector.load %arg6[%c0_11, %c0_12] : memref<32x32xf32, #tpu.memory_space<vmem>>, vector<32x32xf32>
    %cst_13 = arith.constant dense<0.000000e+00> : vector<16x32xf32>
    %37 = tpu.matmul %35, %36, %cst_13 {dimension_numbers = #tpu.dot_dimension_numbers<[1], [0], [0], [1], [0, 0, 1, 1], [], []>} : vector<16x32xf32>, vector<32x32xf32>, vector<16x32xf32> -> vector<16x32xf32>
    %c0_14 = arith.constant 0 : index
    %c0_15 = arith.constant 0 : index
    %38 = vector.load %arg8[%c0_14, %c0_15] : memref<8x32xf32, #tpu.memory_space<vmem>>, vector<8x32xf32>
    %cst_16 = arith.constant dense<0.000000e+00> : vector<16x32xf32>
    %39 = tpu.matmul %31, %38, %cst_16 {dimension_numbers = #tpu.dot_dimension_numbers<[1], [0], [0], [1], [0, 0, 1, 1], [], []>} : vector<16x8xf32>, vector<8x32xf32>, vector<16x32xf32> -> vector<16x32xf32>
    %40 = arith.addf %37, %39 : vector<16x32xf32>
    %c0_17 = arith.constant 0 : index
    %c0_18 = arith.constant 0 : index
    %41 = vector.load %arg7[%c0_17, %c0_18] : memref<1x32xf32, #tpu.memory_space<vmem>>, vector<1x32xf32>
    %42 = vector.broadcast %32 : vector<16x1xf32> to vector<16x32xf32>
    %43 = vector.broadcast %41 : vector<1x32xf32> to vector<16x32xf32>
    %44 = arith.mulf %42, %43 : vector<16x32xf32>
    %45 = arith.addf %40, %44 : vector<16x32xf32>
    %c0_19 = arith.constant 0 : index
    %c0_20 = arith.constant 0 : index
    %46 = vector.load %arg9[%c0_19, %c0_20] : memref<1x32xf32, #tpu.memory_space<vmem>>, vector<1x32xf32>
    %47 = vector.broadcast %46 : vector<1x32xf32> to vector<16x32xf32>
    %48 = arith.addf %45, %47 : vector<16x32xf32>
    %49 = arith.addf %48, %34 : vector<16x32xf32>
    %c0_21 = arith.constant 0 : index
    %c0_22 = arith.constant 0 : index
    %50 = vector.load %arg3[%c0_21, %c0_22] : memref<8x8xf32, #tpu.memory_space<vmem>>, vector<8x8xf32>
    %cst_23 = arith.constant 0xFF800000 : f32
    %51 = vector.broadcast %cst_23 : f32 to vector<8x8xf32>
    %52 = tpu.concatenate %50, %51 in 1 : vector<8x8xf32>, vector<8x8xf32> -> vector<8x16xf32>
    %53 = tpu.concatenate %51, %50 in 1 : vector<8x8xf32>, vector<8x8xf32> -> vector<8x16xf32>
    %54 = tpu.concatenate %52, %53 in 0 : vector<8x16xf32>, vector<8x16xf32> -> vector<16x16xf32>
    %c0_24 = arith.constant 0 : index
    %c0_25 = arith.constant 0 : index
    %c0_26 = arith.constant 0 : index
    %55 = vector.load %arg10[%c0_24, %c0_25, %c0_26] : memref<2x32x96xf32, #tpu.memory_space<vmem>>, vector<1x32x96xf32>
    %56 = vector.shape_cast %55 : vector<1x32x96xf32> to vector<32x96xf32>
    %cst_27 = arith.constant dense<0.000000e+00> : vector<16x96xf32>
    %57 = tpu.matmul %49, %56, %cst_27 {dimension_numbers = #tpu.dot_dimension_numbers<[1], [0], [0], [1], [0, 0, 1, 1], [], []>} : vector<16x32xf32>, vector<32x96xf32>, vector<16x96xf32> -> vector<16x96xf32>
    %c0_28 = arith.constant 0 : index
    %c0_29 = arith.constant 0 : index
    %c0_30 = arith.constant 0 : index
    %58 = vector.load %arg11[%c0_28, %c0_29, %c0_30] : memref<2x1x96xf32, #tpu.memory_space<vmem>>, vector<1x1x96xf32>
    %59 = vector.shape_cast %58 : vector<1x1x96xf32> to vector<1x96xf32>
    %60 = vector.broadcast %59 : vector<1x96xf32> to vector<16x96xf32>
    %61 = arith.addf %57, %60 : vector<16x96xf32>
    %62 = vector.extract_strided_slice %61 {offsets = [0, 0], sizes = [16, 32], strides = [1, 1]} : vector<16x96xf32> to vector<16x32xf32>
    %63 = vector.extract_strided_slice %61 {offsets = [0, 32], sizes = [16, 32], strides = [1, 1]} : vector<16x96xf32> to vector<16x32xf32>
    %64 = vector.extract_strided_slice %61 {offsets = [0, 64], sizes = [16, 32], strides = [1, 1]} : vector<16x96xf32> to vector<16x32xf32>
    %65 = vector.extract_strided_slice %62 {offsets = [0, 0], sizes = [16, 16], strides = [1, 1]} : vector<16x32xf32> to vector<16x16xf32>
    %66 = vector.extract_strided_slice %63 {offsets = [0, 0], sizes = [16, 16], strides = [1, 1]} : vector<16x32xf32> to vector<16x16xf32>
    %67 = vector.extract_strided_slice %64 {offsets = [0, 0], sizes = [16, 16], strides = [1, 1]} : vector<16x32xf32> to vector<16x16xf32>
    %cst_31 = arith.constant dense<0.000000e+00> : vector<16x16xf32>
    %68 = tpu.matmul %65, %66, %cst_31 {dimension_numbers = #tpu.dot_dimension_numbers<[1], [1], [0], [0], [0, 0, 1, 0], [], []>} : vector<16x16xf32>, vector<16x16xf32>, vector<16x16xf32> -> vector<16x16xf32>
    %cst_32 = arith.constant 2.500000e-01 : f32
    %69 = vector.broadcast %cst_32 : f32 to vector<16x16xf32>
    %70 = arith.mulf %68, %69 : vector<16x16xf32>
    %71 = arith.addf %70, %54 : vector<16x16xf32>
    %cst_33 = arith.constant dense<0xFF800000> : vector<16xf32>
    %72 = vector.multi_reduction <maximumf>, %71, %cst_33 [1] : vector<16x16xf32> to vector<16xf32>
    %73 = vector.shape_cast %72 : vector<16xf32> to vector<16x1xf32>
    %74 = vector.broadcast %73 : vector<16x1xf32> to vector<16x16xf32>
    %75 = arith.subf %71, %74 : vector<16x16xf32>
    %76 = math.exp %75 : vector<16x16xf32>
    %cst_34 = arith.constant dense<0.000000e+00> : vector<16xf32>
    %77 = vector.multi_reduction <add>, %76, %cst_34 [1] : vector<16x16xf32> to vector<16xf32>
    %78 = vector.shape_cast %77 : vector<16xf32> to vector<16x1xf32>
    %79 = tpu.reciprocal %78 {approx = true} : vector<16x1xf32> -> vector<16x1xf32>
    %80 = vector.broadcast %79 : vector<16x1xf32> to vector<16x16xf32>
    %81 = arith.mulf %76, %80 : vector<16x16xf32>
    %cst_35 = arith.constant dense<0.000000e+00> : vector<16x16xf32>
    %82 = tpu.matmul %81, %67, %cst_35 {dimension_numbers = #tpu.dot_dimension_numbers<[1], [0], [0], [1], [0, 0, 1, 1], [], []>} : vector<16x16xf32>, vector<16x16xf32>, vector<16x16xf32> -> vector<16x16xf32>
    %83 = vector.extract_strided_slice %62 {offsets = [0, 16], sizes = [16, 16], strides = [1, 1]} : vector<16x32xf32> to vector<16x16xf32>
    %84 = vector.extract_strided_slice %63 {offsets = [0, 16], sizes = [16, 16], strides = [1, 1]} : vector<16x32xf32> to vector<16x16xf32>
    %85 = vector.extract_strided_slice %64 {offsets = [0, 16], sizes = [16, 16], strides = [1, 1]} : vector<16x32xf32> to vector<16x16xf32>
    %cst_36 = arith.constant dense<0.000000e+00> : vector<16x16xf32>
    %86 = tpu.matmul %83, %84, %cst_36 {dimension_numbers = #tpu.dot_dimension_numbers<[1], [1], [0], [0], [0, 0, 1, 0], [], []>} : vector<16x16xf32>, vector<16x16xf32>, vector<16x16xf32> -> vector<16x16xf32>
    %cst_37 = arith.constant 2.500000e-01 : f32
    %87 = vector.broadcast %cst_37 : f32 to vector<16x16xf32>
    %88 = arith.mulf %86, %87 : vector<16x16xf32>
    %89 = arith.addf %88, %54 : vector<16x16xf32>
    %cst_38 = arith.constant dense<0xFF800000> : vector<16xf32>
    %90 = vector.multi_reduction <maximumf>, %89, %cst_38 [1] : vector<16x16xf32> to vector<16xf32>
    %91 = vector.shape_cast %90 : vector<16xf32> to vector<16x1xf32>
    %92 = vector.broadcast %91 : vector<16x1xf32> to vector<16x16xf32>
    %93 = arith.subf %89, %92 : vector<16x16xf32>
    %94 = math.exp %93 : vector<16x16xf32>
    %cst_39 = arith.constant dense<0.000000e+00> : vector<16xf32>
    %95 = vector.multi_reduction <add>, %94, %cst_39 [1] : vector<16x16xf32> to vector<16xf32>
    %96 = vector.shape_cast %95 : vector<16xf32> to vector<16x1xf32>
    %97 = tpu.reciprocal %96 {approx = true} : vector<16x1xf32> -> vector<16x1xf32>
    %98 = vector.broadcast %97 : vector<16x1xf32> to vector<16x16xf32>
    %99 = arith.mulf %94, %98 : vector<16x16xf32>
    %cst_40 = arith.constant dense<0.000000e+00> : vector<16x16xf32>
    %100 = tpu.matmul %99, %85, %cst_40 {dimension_numbers = #tpu.dot_dimension_numbers<[1], [0], [0], [1], [0, 0, 1, 1], [], []>} : vector<16x16xf32>, vector<16x16xf32>, vector<16x16xf32> -> vector<16x16xf32>
    %101 = tpu.concatenate %82, %100 in 1 : vector<16x16xf32>, vector<16x16xf32> -> vector<16x32xf32>
    %c0_41 = arith.constant 0 : index
    %c0_42 = arith.constant 0 : index
    %c0_43 = arith.constant 0 : index
    %102 = vector.load %arg12[%c0_41, %c0_42, %c0_43] : memref<2x32x32xf32, #tpu.memory_space<vmem>>, vector<1x32x32xf32>
    %103 = vector.shape_cast %102 : vector<1x32x32xf32> to vector<32x32xf32>
    %cst_44 = arith.constant dense<0.000000e+00> : vector<16x32xf32>
    %104 = tpu.matmul %101, %103, %cst_44 {dimension_numbers = #tpu.dot_dimension_numbers<[1], [0], [0], [1], [0, 0, 1, 1], [], []>} : vector<16x32xf32>, vector<32x32xf32>, vector<16x32xf32> -> vector<16x32xf32>
    %c0_45 = arith.constant 0 : index
    %c0_46 = arith.constant 0 : index
    %c0_47 = arith.constant 0 : index
    %105 = vector.load %arg13[%c0_45, %c0_46, %c0_47] : memref<2x1x32xf32, #tpu.memory_space<vmem>>, vector<1x1x32xf32>
    %106 = vector.shape_cast %105 : vector<1x1x32xf32> to vector<1x32xf32>
    %107 = vector.broadcast %106 : vector<1x32xf32> to vector<16x32xf32>
    %108 = arith.addf %104, %107 : vector<16x32xf32>
    %109 = arith.addf %49, %108 : vector<16x32xf32>
    %c0_48 = arith.constant 0 : index
    %c0_49 = arith.constant 0 : index
    %c0_50 = arith.constant 0 : index
    %110 = vector.load %arg14[%c0_48, %c0_49, %c0_50] : memref<2x1x32xf32, #tpu.memory_space<vmem>>, vector<1x1x32xf32>
    %111 = vector.shape_cast %110 : vector<1x1x32xf32> to vector<1x32xf32>
    %c0_51 = arith.constant 0 : index
    %c0_52 = arith.constant 0 : index
    %c0_53 = arith.constant 0 : index
    %112 = vector.load %arg15[%c0_51, %c0_52, %c0_53] : memref<2x1x32xf32, #tpu.memory_space<vmem>>, vector<1x1x32xf32>
    %113 = vector.shape_cast %112 : vector<1x1x32xf32> to vector<1x32xf32>
    %cst_54 = arith.constant dense<0.000000e+00> : vector<16xf32>
    %114 = vector.multi_reduction <add>, %109, %cst_54 [1] : vector<16x32xf32> to vector<16xf32>
    %115 = vector.shape_cast %114 : vector<16xf32> to vector<16x1xf32>
    %cst_55 = arith.constant 3.200000e+01 : f32
    %116 = vector.broadcast %cst_55 : f32 to vector<16x1xf32>
    %117 = arith.divf %115, %116 : vector<16x1xf32>
    %118 = vector.broadcast %117 : vector<16x1xf32> to vector<16x32xf32>
    %119 = arith.subf %109, %118 : vector<16x32xf32>
    %120 = arith.mulf %119, %119 : vector<16x32xf32>
    %cst_56 = arith.constant dense<0.000000e+00> : vector<16xf32>
    %121 = vector.multi_reduction <add>, %120, %cst_56 [1] : vector<16x32xf32> to vector<16xf32>
    %122 = vector.shape_cast %121 : vector<16xf32> to vector<16x1xf32>
    %cst_57 = arith.constant 3.200000e+01 : f32
    %123 = vector.broadcast %cst_57 : f32 to vector<16x1xf32>
    %124 = arith.divf %122, %123 : vector<16x1xf32>
    %cst_58 = arith.constant 9.99999974E-6 : f32
    %125 = vector.broadcast %cst_58 : f32 to vector<16x1xf32>
    %126 = arith.addf %124, %125 : vector<16x1xf32>
    %127 = math.rsqrt %126 : vector<16x1xf32>
    %128 = vector.broadcast %127 : vector<16x1xf32> to vector<16x32xf32>
    %129 = arith.mulf %119, %128 : vector<16x32xf32>
    %130 = vector.broadcast %111 : vector<1x32xf32> to vector<16x32xf32>
    %131 = arith.mulf %129, %130 : vector<16x32xf32>
    %132 = vector.broadcast %113 : vector<1x32xf32> to vector<16x32xf32>
    %133 = arith.addf %131, %132 : vector<16x32xf32>
    %c0_59 = arith.constant 0 : index
    %c0_60 = arith.constant 0 : index
    %c0_61 = arith.constant 0 : index
    %134 = vector.load %arg16[%c0_59, %c0_60, %c0_61] : memref<2x32x64xf32, #tpu.memory_space<vmem>>, vector<1x32x64xf32>
    %135 = vector.shape_cast %134 : vector<1x32x64xf32> to vector<32x64xf32>
    %cst_62 = arith.constant dense<0.000000e+00> : vector<16x64xf32>
    %136 = tpu.matmul %133, %135, %cst_62 {dimension_numbers = #tpu.dot_dimension_numbers<[1], [0], [0], [1], [0, 0, 1, 1], [], []>} : vector<16x32xf32>, vector<32x64xf32>, vector<16x64xf32> -> vector<16x64xf32>
    %c0_63 = arith.constant 0 : index
    %c0_64 = arith.constant 0 : index
    %c0_65 = arith.constant 0 : index
    %137 = vector.load %arg17[%c0_63, %c0_64, %c0_65] : memref<2x1x64xf32, #tpu.memory_space<vmem>>, vector<1x1x64xf32>
    %138 = vector.shape_cast %137 : vector<1x1x64xf32> to vector<1x64xf32>
    %139 = vector.broadcast %138 : vector<1x64xf32> to vector<16x64xf32>
    %140 = arith.addf %136, %139 : vector<16x64xf32>
    %cst_66 = arith.constant 0.000000e+00 : f32
    %141 = vector.broadcast %cst_66 : f32 to vector<16x64xf32>
    %142 = arith.maximumf %140, %141 : vector<16x64xf32>
    %c0_67 = arith.constant 0 : index
    %c0_68 = arith.constant 0 : index
    %c0_69 = arith.constant 0 : index
    %143 = vector.load %arg18[%c0_67, %c0_68, %c0_69] : memref<2x64x32xf32, #tpu.memory_space<vmem>>, vector<1x64x32xf32>
    %144 = vector.shape_cast %143 : vector<1x64x32xf32> to vector<64x32xf32>
    %cst_70 = arith.constant dense<0.000000e+00> : vector<16x32xf32>
    %145 = tpu.matmul %142, %144, %cst_70 {dimension_numbers = #tpu.dot_dimension_numbers<[1], [0], [0], [1], [0, 0, 1, 1], [], []>} : vector<16x64xf32>, vector<64x32xf32>, vector<16x32xf32> -> vector<16x32xf32>
    %c0_71 = arith.constant 0 : index
    %c0_72 = arith.constant 0 : index
    %c0_73 = arith.constant 0 : index
    %146 = vector.load %arg19[%c0_71, %c0_72, %c0_73] : memref<2x1x32xf32, #tpu.memory_space<vmem>>, vector<1x1x32xf32>
    %147 = vector.shape_cast %146 : vector<1x1x32xf32> to vector<1x32xf32>
    %148 = vector.broadcast %147 : vector<1x32xf32> to vector<16x32xf32>
    %149 = arith.addf %145, %148 : vector<16x32xf32>
    %150 = arith.addf %133, %149 : vector<16x32xf32>
    %c0_74 = arith.constant 0 : index
    %c0_75 = arith.constant 0 : index
    %c0_76 = arith.constant 0 : index
    %151 = vector.load %arg20[%c0_74, %c0_75, %c0_76] : memref<2x1x32xf32, #tpu.memory_space<vmem>>, vector<1x1x32xf32>
    %152 = vector.shape_cast %151 : vector<1x1x32xf32> to vector<1x32xf32>
    %c0_77 = arith.constant 0 : index
    %c0_78 = arith.constant 0 : index
    %c0_79 = arith.constant 0 : index
    %153 = vector.load %arg21[%c0_77, %c0_78, %c0_79] : memref<2x1x32xf32, #tpu.memory_space<vmem>>, vector<1x1x32xf32>
    %154 = vector.shape_cast %153 : vector<1x1x32xf32> to vector<1x32xf32>
    %cst_80 = arith.constant dense<0.000000e+00> : vector<16xf32>
    %155 = vector.multi_reduction <add>, %150, %cst_80 [1] : vector<16x32xf32> to vector<16xf32>
    %156 = vector.shape_cast %155 : vector<16xf32> to vector<16x1xf32>
    %cst_81 = arith.constant 3.200000e+01 : f32
    %157 = vector.broadcast %cst_81 : f32 to vector<16x1xf32>
    %158 = arith.divf %156, %157 : vector<16x1xf32>
    %159 = vector.broadcast %158 : vector<16x1xf32> to vector<16x32xf32>
    %160 = arith.subf %150, %159 : vector<16x32xf32>
    %161 = arith.mulf %160, %160 : vector<16x32xf32>
    %cst_82 = arith.constant dense<0.000000e+00> : vector<16xf32>
    %162 = vector.multi_reduction <add>, %161, %cst_82 [1] : vector<16x32xf32> to vector<16xf32>
    %163 = vector.shape_cast %162 : vector<16xf32> to vector<16x1xf32>
    %cst_83 = arith.constant 3.200000e+01 : f32
    %164 = vector.broadcast %cst_83 : f32 to vector<16x1xf32>
    %165 = arith.divf %163, %164 : vector<16x1xf32>
    %cst_84 = arith.constant 9.99999974E-6 : f32
    %166 = vector.broadcast %cst_84 : f32 to vector<16x1xf32>
    %167 = arith.addf %165, %166 : vector<16x1xf32>
    %168 = math.rsqrt %167 : vector<16x1xf32>
    %169 = vector.broadcast %168 : vector<16x1xf32> to vector<16x32xf32>
    %170 = arith.mulf %160, %169 : vector<16x32xf32>
    %171 = vector.broadcast %152 : vector<1x32xf32> to vector<16x32xf32>
    %172 = arith.mulf %170, %171 : vector<16x32xf32>
    %173 = vector.broadcast %154 : vector<1x32xf32> to vector<16x32xf32>
    %174 = arith.addf %172, %173 : vector<16x32xf32>
    %c1 = arith.constant 1 : index
    %c0_85 = arith.constant 0 : index
    %c0_86 = arith.constant 0 : index
    %175 = vector.load %arg10[%c1, %c0_85, %c0_86] : memref<2x32x96xf32, #tpu.memory_space<vmem>>, vector<1x32x96xf32>
    %176 = vector.shape_cast %175 : vector<1x32x96xf32> to vector<32x96xf32>
    %cst_87 = arith.constant dense<0.000000e+00> : vector<16x96xf32>
    %177 = tpu.matmul %174, %176, %cst_87 {dimension_numbers = #tpu.dot_dimension_numbers<[1], [0], [0], [1], [0, 0, 1, 1], [], []>} : vector<16x32xf32>, vector<32x96xf32>, vector<16x96xf32> -> vector<16x96xf32>
    %c1_88 = arith.constant 1 : index
    %c0_89 = arith.constant 0 : index
    %c0_90 = arith.constant 0 : index
    %178 = vector.load %arg11[%c1_88, %c0_89, %c0_90] : memref<2x1x96xf32, #tpu.memory_space<vmem>>, vector<1x1x96xf32>
    %179 = vector.shape_cast %178 : vector<1x1x96xf32> to vector<1x96xf32>
    %180 = vector.broadcast %179 : vector<1x96xf32> to vector<16x96xf32>
    %181 = arith.addf %177, %180 : vector<16x96xf32>
    %182 = vector.extract_strided_slice %181 {offsets = [0, 0], sizes = [16, 32], strides = [1, 1]} : vector<16x96xf32> to vector<16x32xf32>
    %183 = vector.extract_strided_slice %181 {offsets = [0, 32], sizes = [16, 32], strides = [1, 1]} : vector<16x96xf32> to vector<16x32xf32>
    %184 = vector.extract_strided_slice %181 {offsets = [0, 64], sizes = [16, 32], strides = [1, 1]} : vector<16x96xf32> to vector<16x32xf32>
    %185 = vector.extract_strided_slice %182 {offsets = [0, 0], sizes = [16, 16], strides = [1, 1]} : vector<16x32xf32> to vector<16x16xf32>
    %186 = vector.extract_strided_slice %183 {offsets = [0, 0], sizes = [16, 16], strides = [1, 1]} : vector<16x32xf32> to vector<16x16xf32>
    %187 = vector.extract_strided_slice %184 {offsets = [0, 0], sizes = [16, 16], strides = [1, 1]} : vector<16x32xf32> to vector<16x16xf32>
    %cst_91 = arith.constant dense<0.000000e+00> : vector<16x16xf32>
    %188 = tpu.matmul %185, %186, %cst_91 {dimension_numbers = #tpu.dot_dimension_numbers<[1], [1], [0], [0], [0, 0, 1, 0], [], []>} : vector<16x16xf32>, vector<16x16xf32>, vector<16x16xf32> -> vector<16x16xf32>
    %cst_92 = arith.constant 2.500000e-01 : f32
    %189 = vector.broadcast %cst_92 : f32 to vector<16x16xf32>
    %190 = arith.mulf %188, %189 : vector<16x16xf32>
    %191 = arith.addf %190, %54 : vector<16x16xf32>
    %cst_93 = arith.constant dense<0xFF800000> : vector<16xf32>
    %192 = vector.multi_reduction <maximumf>, %191, %cst_93 [1] : vector<16x16xf32> to vector<16xf32>
    %193 = vector.shape_cast %192 : vector<16xf32> to vector<16x1xf32>
    %194 = vector.broadcast %193 : vector<16x1xf32> to vector<16x16xf32>
    %195 = arith.subf %191, %194 : vector<16x16xf32>
    %196 = math.exp %195 : vector<16x16xf32>
    %cst_94 = arith.constant dense<0.000000e+00> : vector<16xf32>
    %197 = vector.multi_reduction <add>, %196, %cst_94 [1] : vector<16x16xf32> to vector<16xf32>
    %198 = vector.shape_cast %197 : vector<16xf32> to vector<16x1xf32>
    %199 = tpu.reciprocal %198 {approx = true} : vector<16x1xf32> -> vector<16x1xf32>
    %200 = vector.broadcast %199 : vector<16x1xf32> to vector<16x16xf32>
    %201 = arith.mulf %196, %200 : vector<16x16xf32>
    %cst_95 = arith.constant dense<0.000000e+00> : vector<16x16xf32>
    %202 = tpu.matmul %201, %187, %cst_95 {dimension_numbers = #tpu.dot_dimension_numbers<[1], [0], [0], [1], [0, 0, 1, 1], [], []>} : vector<16x16xf32>, vector<16x16xf32>, vector<16x16xf32> -> vector<16x16xf32>
    %203 = vector.extract_strided_slice %182 {offsets = [0, 16], sizes = [16, 16], strides = [1, 1]} : vector<16x32xf32> to vector<16x16xf32>
    %204 = vector.extract_strided_slice %183 {offsets = [0, 16], sizes = [16, 16], strides = [1, 1]} : vector<16x32xf32> to vector<16x16xf32>
    %205 = vector.extract_strided_slice %184 {offsets = [0, 16], sizes = [16, 16], strides = [1, 1]} : vector<16x32xf32> to vector<16x16xf32>
    %cst_96 = arith.constant dense<0.000000e+00> : vector<16x16xf32>
    %206 = tpu.matmul %203, %204, %cst_96 {dimension_numbers = #tpu.dot_dimension_numbers<[1], [1], [0], [0], [0, 0, 1, 0], [], []>} : vector<16x16xf32>, vector<16x16xf32>, vector<16x16xf32> -> vector<16x16xf32>
    %cst_97 = arith.constant 2.500000e-01 : f32
    %207 = vector.broadcast %cst_97 : f32 to vector<16x16xf32>
    %208 = arith.mulf %206, %207 : vector<16x16xf32>
    %209 = arith.addf %208, %54 : vector<16x16xf32>
    %cst_98 = arith.constant dense<0xFF800000> : vector<16xf32>
    %210 = vector.multi_reduction <maximumf>, %209, %cst_98 [1] : vector<16x16xf32> to vector<16xf32>
    %211 = vector.shape_cast %210 : vector<16xf32> to vector<16x1xf32>
    %212 = vector.broadcast %211 : vector<16x1xf32> to vector<16x16xf32>
    %213 = arith.subf %209, %212 : vector<16x16xf32>
    %214 = math.exp %213 : vector<16x16xf32>
    %cst_99 = arith.constant dense<0.000000e+00> : vector<16xf32>
    %215 = vector.multi_reduction <add>, %214, %cst_99 [1] : vector<16x16xf32> to vector<16xf32>
    %216 = vector.shape_cast %215 : vector<16xf32> to vector<16x1xf32>
    %217 = tpu.reciprocal %216 {approx = true} : vector<16x1xf32> -> vector<16x1xf32>
    %218 = vector.broadcast %217 : vector<16x1xf32> to vector<16x16xf32>
    %219 = arith.mulf %214, %218 : vector<16x16xf32>
    %cst_100 = arith.constant dense<0.000000e+00> : vector<16x16xf32>
    %220 = tpu.matmul %219, %205, %cst_100 {dimension_numbers = #tpu.dot_dimension_numbers<[1], [0], [0], [1], [0, 0, 1, 1], [], []>} : vector<16x16xf32>, vector<16x16xf32>, vector<16x16xf32> -> vector<16x16xf32>
    %221 = tpu.concatenate %202, %220 in 1 : vector<16x16xf32>, vector<16x16xf32> -> vector<16x32xf32>
    %c1_101 = arith.constant 1 : index
    %c0_102 = arith.constant 0 : index
    %c0_103 = arith.constant 0 : index
    %222 = vector.load %arg12[%c1_101, %c0_102, %c0_103] : memref<2x32x32xf32, #tpu.memory_space<vmem>>, vector<1x32x32xf32>
    %223 = vector.shape_cast %222 : vector<1x32x32xf32> to vector<32x32xf32>
    %cst_104 = arith.constant dense<0.000000e+00> : vector<16x32xf32>
    %224 = tpu.matmul %221, %223, %cst_104 {dimension_numbers = #tpu.dot_dimension_numbers<[1], [0], [0], [1], [0, 0, 1, 1], [], []>} : vector<16x32xf32>, vector<32x32xf32>, vector<16x32xf32> -> vector<16x32xf32>
    %c1_105 = arith.constant 1 : index
    %c0_106 = arith.constant 0 : index
    %c0_107 = arith.constant 0 : index
    %225 = vector.load %arg13[%c1_105, %c0_106, %c0_107] : memref<2x1x32xf32, #tpu.memory_space<vmem>>, vector<1x1x32xf32>
    %226 = vector.shape_cast %225 : vector<1x1x32xf32> to vector<1x32xf32>
    %227 = vector.broadcast %226 : vector<1x32xf32> to vector<16x32xf32>
    %228 = arith.addf %224, %227 : vector<16x32xf32>
    %229 = arith.addf %174, %228 : vector<16x32xf32>
    %c1_108 = arith.constant 1 : index
    %c0_109 = arith.constant 0 : index
    %c0_110 = arith.constant 0 : index
    %230 = vector.load %arg14[%c1_108, %c0_109, %c0_110] : memref<2x1x32xf32, #tpu.memory_space<vmem>>, vector<1x1x32xf32>
    %231 = vector.shape_cast %230 : vector<1x1x32xf32> to vector<1x32xf32>
    %c1_111 = arith.constant 1 : index
    %c0_112 = arith.constant 0 : index
    %c0_113 = arith.constant 0 : index
    %232 = vector.load %arg15[%c1_111, %c0_112, %c0_113] : memref<2x1x32xf32, #tpu.memory_space<vmem>>, vector<1x1x32xf32>
    %233 = vector.shape_cast %232 : vector<1x1x32xf32> to vector<1x32xf32>
    %cst_114 = arith.constant dense<0.000000e+00> : vector<16xf32>
    %234 = vector.multi_reduction <add>, %229, %cst_114 [1] : vector<16x32xf32> to vector<16xf32>
    %235 = vector.shape_cast %234 : vector<16xf32> to vector<16x1xf32>
    %cst_115 = arith.constant 3.200000e+01 : f32
    %236 = vector.broadcast %cst_115 : f32 to vector<16x1xf32>
    %237 = arith.divf %235, %236 : vector<16x1xf32>
    %238 = vector.broadcast %237 : vector<16x1xf32> to vector<16x32xf32>
    %239 = arith.subf %229, %238 : vector<16x32xf32>
    %240 = arith.mulf %239, %239 : vector<16x32xf32>
    %cst_116 = arith.constant dense<0.000000e+00> : vector<16xf32>
    %241 = vector.multi_reduction <add>, %240, %cst_116 [1] : vector<16x32xf32> to vector<16xf32>
    %242 = vector.shape_cast %241 : vector<16xf32> to vector<16x1xf32>
    %cst_117 = arith.constant 3.200000e+01 : f32
    %243 = vector.broadcast %cst_117 : f32 to vector<16x1xf32>
    %244 = arith.divf %242, %243 : vector<16x1xf32>
    %cst_118 = arith.constant 9.99999974E-6 : f32
    %245 = vector.broadcast %cst_118 : f32 to vector<16x1xf32>
    %246 = arith.addf %244, %245 : vector<16x1xf32>
    %247 = math.rsqrt %246 : vector<16x1xf32>
    %248 = vector.broadcast %247 : vector<16x1xf32> to vector<16x32xf32>
    %249 = arith.mulf %239, %248 : vector<16x32xf32>
    %250 = vector.broadcast %231 : vector<1x32xf32> to vector<16x32xf32>
    %251 = arith.mulf %249, %250 : vector<16x32xf32>
    %252 = vector.broadcast %233 : vector<1x32xf32> to vector<16x32xf32>
    %253 = arith.addf %251, %252 : vector<16x32xf32>
    %c1_119 = arith.constant 1 : index
    %c0_120 = arith.constant 0 : index
    %c0_121 = arith.constant 0 : index
    %254 = vector.load %arg16[%c1_119, %c0_120, %c0_121] : memref<2x32x64xf32, #tpu.memory_space<vmem>>, vector<1x32x64xf32>
    %255 = vector.shape_cast %254 : vector<1x32x64xf32> to vector<32x64xf32>
    %cst_122 = arith.constant dense<0.000000e+00> : vector<16x64xf32>
    %256 = tpu.matmul %253, %255, %cst_122 {dimension_numbers = #tpu.dot_dimension_numbers<[1], [0], [0], [1], [0, 0, 1, 1], [], []>} : vector<16x32xf32>, vector<32x64xf32>, vector<16x64xf32> -> vector<16x64xf32>
    %c1_123 = arith.constant 1 : index
    %c0_124 = arith.constant 0 : index
    %c0_125 = arith.constant 0 : index
    %257 = vector.load %arg17[%c1_123, %c0_124, %c0_125] : memref<2x1x64xf32, #tpu.memory_space<vmem>>, vector<1x1x64xf32>
    %258 = vector.shape_cast %257 : vector<1x1x64xf32> to vector<1x64xf32>
    %259 = vector.broadcast %258 : vector<1x64xf32> to vector<16x64xf32>
    %260 = arith.addf %256, %259 : vector<16x64xf32>
    %cst_126 = arith.constant 0.000000e+00 : f32
    %261 = vector.broadcast %cst_126 : f32 to vector<16x64xf32>
    %262 = arith.maximumf %260, %261 : vector<16x64xf32>
    %c1_127 = arith.constant 1 : index
    %c0_128 = arith.constant 0 : index
    %c0_129 = arith.constant 0 : index
    %263 = vector.load %arg18[%c1_127, %c0_128, %c0_129] : memref<2x64x32xf32, #tpu.memory_space<vmem>>, vector<1x64x32xf32>
    %264 = vector.shape_cast %263 : vector<1x64x32xf32> to vector<64x32xf32>
    %cst_130 = arith.constant dense<0.000000e+00> : vector<16x32xf32>
    %265 = tpu.matmul %262, %264, %cst_130 {dimension_numbers = #tpu.dot_dimension_numbers<[1], [0], [0], [1], [0, 0, 1, 1], [], []>} : vector<16x64xf32>, vector<64x32xf32>, vector<16x32xf32> -> vector<16x32xf32>
    %c1_131 = arith.constant 1 : index
    %c0_132 = arith.constant 0 : index
    %c0_133 = arith.constant 0 : index
    %266 = vector.load %arg19[%c1_131, %c0_132, %c0_133] : memref<2x1x32xf32, #tpu.memory_space<vmem>>, vector<1x1x32xf32>
    %267 = vector.shape_cast %266 : vector<1x1x32xf32> to vector<1x32xf32>
    %268 = vector.broadcast %267 : vector<1x32xf32> to vector<16x32xf32>
    %269 = arith.addf %265, %268 : vector<16x32xf32>
    %270 = arith.addf %253, %269 : vector<16x32xf32>
    %c1_134 = arith.constant 1 : index
    %c0_135 = arith.constant 0 : index
    %c0_136 = arith.constant 0 : index
    %271 = vector.load %arg20[%c1_134, %c0_135, %c0_136] : memref<2x1x32xf32, #tpu.memory_space<vmem>>, vector<1x1x32xf32>
    %272 = vector.shape_cast %271 : vector<1x1x32xf32> to vector<1x32xf32>
    %c1_137 = arith.constant 1 : index
    %c0_138 = arith.constant 0 : index
    %c0_139 = arith.constant 0 : index
    %273 = vector.load %arg21[%c1_137, %c0_138, %c0_139] : memref<2x1x32xf32, #tpu.memory_space<vmem>>, vector<1x1x32xf32>
    %274 = vector.shape_cast %273 : vector<1x1x32xf32> to vector<1x32xf32>
    %cst_140 = arith.constant dense<0.000000e+00> : vector<16xf32>
    %275 = vector.multi_reduction <add>, %270, %cst_140 [1] : vector<16x32xf32> to vector<16xf32>
    %276 = vector.shape_cast %275 : vector<16xf32> to vector<16x1xf32>
    %cst_141 = arith.constant 3.200000e+01 : f32
    %277 = vector.broadcast %cst_141 : f32 to vector<16x1xf32>
    %278 = arith.divf %276, %277 : vector<16x1xf32>
    %279 = vector.broadcast %278 : vector<16x1xf32> to vector<16x32xf32>
    %280 = arith.subf %270, %279 : vector<16x32xf32>
    %281 = arith.mulf %280, %280 : vector<16x32xf32>
    %cst_142 = arith.constant dense<0.000000e+00> : vector<16xf32>
    %282 = vector.multi_reduction <add>, %281, %cst_142 [1] : vector<16x32xf32> to vector<16xf32>
    %283 = vector.shape_cast %282 : vector<16xf32> to vector<16x1xf32>
    %cst_143 = arith.constant 3.200000e+01 : f32
    %284 = vector.broadcast %cst_143 : f32 to vector<16x1xf32>
    %285 = arith.divf %283, %284 : vector<16x1xf32>
    %cst_144 = arith.constant 9.99999974E-6 : f32
    %286 = vector.broadcast %cst_144 : f32 to vector<16x1xf32>
    %287 = arith.addf %285, %286 : vector<16x1xf32>
    %288 = math.rsqrt %287 : vector<16x1xf32>
    %289 = vector.broadcast %288 : vector<16x1xf32> to vector<16x32xf32>
    %290 = arith.mulf %280, %289 : vector<16x32xf32>
    %291 = vector.broadcast %272 : vector<1x32xf32> to vector<16x32xf32>
    %292 = arith.mulf %290, %291 : vector<16x32xf32>
    %293 = vector.broadcast %274 : vector<1x32xf32> to vector<16x32xf32>
    %294 = arith.addf %292, %293 : vector<16x32xf32>
    %295 = vector.extract_strided_slice %294 {offsets = [7, 0], sizes = [1, 32], strides = [1, 1]} : vector<16x32xf32> to vector<1x32xf32>
    %296 = vector.extract_strided_slice %294 {offsets = [15, 0], sizes = [1, 32], strides = [1, 1]} : vector<16x32xf32> to vector<1x32xf32>
    %297 = tpu.concatenate %295, %296 in 0 : vector<1x32xf32>, vector<1x32xf32> -> vector<2x32xf32>
    %c0_145 = arith.constant 0 : index
    %c0_146 = arith.constant 0 : index
    %298 = vector.load %arg22[%c0_145, %c0_146] : memref<32x10xf32, #tpu.memory_space<vmem>>, vector<32x10xf32>
    %cst_147 = arith.constant dense<0.000000e+00> : vector<2x10xf32>
    %299 = tpu.matmul %297, %298, %cst_147 {dimension_numbers = #tpu.dot_dimension_numbers<[1], [0], [0], [1], [0, 0, 1, 1], [], []>} : vector<2x32xf32>, vector<32x10xf32>, vector<2x10xf32> -> vector<2x10xf32>
    %c0_148 = arith.constant 0 : index
    %c0_149 = arith.constant 0 : index
    %300 = vector.load %arg23[%c0_148, %c0_149] : memref<1x10xf32, #tpu.memory_space<vmem>>, vector<1x10xf32>
    %301 = vector.broadcast %300 : vector<1x10xf32> to vector<2x10xf32>
    %302 = arith.addf %299, %301 : vector<2x10xf32>
    %c0_150 = arith.constant 0 : index
    %c0_151 = arith.constant 0 : index
    %303 = vector.load %arg24[%c0_150, %c0_151] : memref<10x16xf32, #tpu.memory_space<vmem>>, vector<10x16xf32>
    %cst_152 = arith.constant dense<0.000000e+00> : vector<2x16xf32>
    %304 = tpu.matmul %302, %303, %cst_152 {dimension_numbers = #tpu.dot_dimension_numbers<[1], [0], [0], [1], [0, 0, 1, 1], [], []>} : vector<2x10xf32>, vector<10x16xf32>, vector<2x16xf32> -> vector<2x16xf32>
    %c0_153 = arith.constant 0 : index
    %c0_154 = arith.constant 0 : index
    %305 = vector.load %arg5[%c0_153, %c0_154] : memref<2x10xf32, #tpu.memory_space<vmem>>, vector<2x10xf32>
    %c0_155 = arith.constant 0 : index
    %c0_156 = arith.constant 0 : index
    %306 = vector.load %arg25[%c0_155, %c0_156] : memref<10x16xf32, #tpu.memory_space<vmem>>, vector<10x16xf32>
    %cst_157 = arith.constant dense<0.000000e+00> : vector<2x16xf32>
    %307 = tpu.matmul %305, %306, %cst_157 {dimension_numbers = #tpu.dot_dimension_numbers<[1], [0], [0], [1], [0, 0, 1, 1], [], []>} : vector<2x10xf32>, vector<10x16xf32>, vector<2x16xf32> -> vector<2x16xf32>
    %308 = arith.addf %304, %307 : vector<2x16xf32>
    %c0_158 = arith.constant 0 : index
    %c0_159 = arith.constant 0 : index
    %309 = vector.load %arg26[%c0_158, %c0_159] : memref<1x16xf32, #tpu.memory_space<vmem>>, vector<1x16xf32>
    %310 = vector.broadcast %309 : vector<1x16xf32> to vector<2x16xf32>
    %311 = arith.addf %308, %310 : vector<2x16xf32>
    %cst_160 = arith.constant 0.000000e+00 : f32
    %312 = vector.broadcast %cst_160 : f32 to vector<2x16xf32>
    %313 = arith.maximumf %311, %312 : vector<2x16xf32>
    %c0_161 = arith.constant 0 : index
    %c0_162 = arith.constant 0 : index
    %314 = vector.load %arg27[%c0_161, %c0_162] : memref<1x16xf32, #tpu.memory_space<vmem>>, vector<1x16xf32>
    %315 = vector.broadcast %314 : vector<1x16xf32> to vector<2x16xf32>
    %316 = arith.mulf %313, %315 : vector<2x16xf32>
    %c0_163 = arith.constant 0 : index
    %c0_164 = arith.constant 0 : index
    %317 = vector.load %arg28[%c0_163, %c0_164] : memref<1x16xf32, #tpu.memory_space<vmem>>, vector<1x16xf32>
    %318 = vector.broadcast %317 : vector<1x16xf32> to vector<2x16xf32>
    %319 = arith.addf %316, %318 : vector<2x16xf32>
    %c0_165 = arith.constant 0 : index
    %c0_166 = arith.constant 0 : index
    %320 = vector.load %arg29[%c0_165, %c0_166] : memref<16x16xf32, #tpu.memory_space<vmem>>, vector<16x16xf32>
    %cst_167 = arith.constant dense<0.000000e+00> : vector<2x16xf32>
    %321 = tpu.matmul %319, %320, %cst_167 {dimension_numbers = #tpu.dot_dimension_numbers<[1], [0], [0], [1], [0, 0, 1, 1], [], []>} : vector<2x16xf32>, vector<16x16xf32>, vector<2x16xf32> -> vector<2x16xf32>
    %c0_168 = arith.constant 0 : index
    %c0_169 = arith.constant 0 : index
    %322 = vector.load %arg30[%c0_168, %c0_169] : memref<1x16xf32, #tpu.memory_space<vmem>>, vector<1x16xf32>
    %323 = vector.broadcast %322 : vector<1x16xf32> to vector<2x16xf32>
    %324 = arith.addf %321, %323 : vector<2x16xf32>
    %cst_170 = arith.constant 0.000000e+00 : f32
    %325 = vector.broadcast %cst_170 : f32 to vector<2x16xf32>
    %326 = arith.maximumf %324, %325 : vector<2x16xf32>
    %c0_171 = arith.constant 0 : index
    %c0_172 = arith.constant 0 : index
    %327 = vector.load %arg27[%c0_171, %c0_172] : memref<1x16xf32, #tpu.memory_space<vmem>>, vector<1x16xf32>
    %328 = vector.broadcast %327 : vector<1x16xf32> to vector<2x16xf32>
    %329 = arith.mulf %326, %328 : vector<2x16xf32>
    %c0_173 = arith.constant 0 : index
    %c0_174 = arith.constant 0 : index
    %330 = vector.load %arg28[%c0_173, %c0_174] : memref<1x16xf32, #tpu.memory_space<vmem>>, vector<1x16xf32>
    %331 = vector.broadcast %330 : vector<1x16xf32> to vector<2x16xf32>
    %332 = arith.addf %329, %331 : vector<2x16xf32>
    %c0_175 = arith.constant 0 : index
    %c0_176 = arith.constant 0 : index
    %333 = vector.load %arg31[%c0_175, %c0_176] : memref<16x4xf32, #tpu.memory_space<vmem>>, vector<16x4xf32>
    %cst_177 = arith.constant dense<0.000000e+00> : vector<2x4xf32>
    %334 = tpu.matmul %332, %333, %cst_177 {dimension_numbers = #tpu.dot_dimension_numbers<[1], [0], [0], [1], [0, 0, 1, 1], [], []>} : vector<2x16xf32>, vector<16x4xf32>, vector<2x4xf32> -> vector<2x4xf32>
    %c0_178 = arith.constant 0 : index
    %c0_179 = arith.constant 0 : index
    %335 = vector.load %arg32[%c0_178, %c0_179] : memref<1x4xf32, #tpu.memory_space<vmem>>, vector<1x4xf32>
    %336 = vector.broadcast %335 : vector<1x4xf32> to vector<2x4xf32>
    %337 = arith.addf %334, %336 : vector<2x4xf32>
    %cst_180 = arith.constant 0.000000e+00 : f32
    %338 = vector.broadcast %cst_180 : f32 to vector<2x4xf32>
    %339 = arith.subf %338, %337 : vector<2x4xf32>
    %340 = math.exp %339 : vector<2x4xf32>
    %cst_181 = arith.constant 1.000000e+00 : f32
    %341 = vector.broadcast %cst_181 : f32 to vector<2x4xf32>
    %342 = arith.addf %341, %340 : vector<2x4xf32>
    %343 = tpu.reciprocal %342 {approx = true} : vector<2x4xf32> -> vector<2x4xf32>
    %c0_182 = arith.constant 0 : index
    %c0_183 = arith.constant 0 : index
    %344 = vector.load %arg33[%c0_182, %c0_183] : memref<2x4xf32, #tpu.memory_space<vmem>>, vector<2x4xf32>
    tpu.vector_store %arg33[%c0_182, %c0_183], %343 {strides = array<i32>} : memref<2x4xf32, #tpu.memory_space<vmem>>, vector<2x4xf32>,
    return
  }
  func.func @transform_0(%arg0: i32) -> (i32, i32) {
    %c0_i32 = arith.constant 0 : i32
    %c0_i32_0 = arith.constant 0 : i32
    %c0_i32_1 = arith.constant 0 : i32
    return %c0_i32, %c0_i32_0 : i32, i32
  }
  func.func @transform_1(%arg0: i32) -> (i32, i32) {
    %c0_i32 = arith.constant 0 : i32
    %c0_i32_0 = arith.constant 0 : i32
    %c0_i32_1 = arith.constant 0 : i32
    return %c0_i32, %c0_i32_0 : i32, i32
  }
  func.func @transform_2(%arg0: i32) -> (i32, i32) {
    %c0_i32 = arith.constant 0 : i32
    %c0_i32_0 = arith.constant 0 : i32
    %c0_i32_1 = arith.constant 0 : i32
    return %c0_i32, %c0_i32_0 : i32, i32
  }
  func.func @transform_3(%arg0: i32) -> (i32, i32) {
    %c0_i32 = arith.constant 0 : i32
    %c0_i32_0 = arith.constant 0 : i32
    %c0_i32_1 = arith.constant 0 : i32
    return %c0_i32, %c0_i32_0 : i32, i32
  }
  func.func @transform_4(%arg0: i32) -> (i32, i32) {
    %c0_i32 = arith.constant 0 : i32
    %c0_i32_0 = arith.constant 0 : i32
    %c0_i32_1 = arith.constant 0 : i32
    return %c0_i32, %c0_i32_0 : i32, i32
  }
  func.func @transform_5(%arg0: i32) -> (i32, i32) {
    %c0_i32 = arith.constant 0 : i32
    %c0_i32_0 = arith.constant 0 : i32
    %c0_i32_1 = arith.constant 0 : i32
    return %c0_i32, %c0_i32_0 : i32, i32
  }
  func.func @transform_6(%arg0: i32) -> (i32, i32) {
    %c0_i32 = arith.constant 0 : i32
    %c0_i32_0 = arith.constant 0 : i32
    %c0_i32_1 = arith.constant 0 : i32
    return %c0_i32, %c0_i32_0 : i32, i32
  }
  func.func @transform_7(%arg0: i32) -> (i32, i32) {
    %c0_i32 = arith.constant 0 : i32
    %c0_i32_0 = arith.constant 0 : i32
    %c0_i32_1 = arith.constant 0 : i32
    return %c0_i32, %c0_i32_0 : i32, i32
  }
  func.func @transform_8(%arg0: i32) -> (i32, i32) {
    %c0_i32 = arith.constant 0 : i32
    %c0_i32_0 = arith.constant 0 : i32
    %c0_i32_1 = arith.constant 0 : i32
    return %c0_i32, %c0_i32_0 : i32, i32
  }
  func.func @transform_9(%arg0: i32) -> (i32, i32, i32) {
    %c0_i32 = arith.constant 0 : i32
    %c0_i32_0 = arith.constant 0 : i32
    %c0_i32_1 = arith.constant 0 : i32
    %c0_i32_2 = arith.constant 0 : i32
    return %c0_i32, %c0_i32_0, %c0_i32_1 : i32, i32, i32
  }
  func.func @transform_10(%arg0: i32) -> (i32, i32, i32) {
    %c0_i32 = arith.constant 0 : i32
    %c0_i32_0 = arith.constant 0 : i32
    %c0_i32_1 = arith.constant 0 : i32
    %c0_i32_2 = arith.constant 0 : i32
    return %c0_i32, %c0_i32_0, %c0_i32_1 : i32, i32, i32
  }
  func.func @transform_11(%arg0: i32) -> (i32, i32, i32) {
    %c0_i32 = arith.constant 0 : i32
    %c0_i32_0 = arith.constant 0 : i32
    %c0_i32_1 = arith.constant 0 : i32
    %c0_i32_2 = arith.constant 0 : i32
    return %c0_i32, %c0_i32_0, %c0_i32_1 : i32, i32, i32
  }
  func.func @transform_12(%arg0: i32) -> (i32, i32, i32) {
    %c0_i32 = arith.constant 0 : i32
    %c0_i32_0 = arith.constant 0 : i32
    %c0_i32_1 = arith.constant 0 : i32
    %c0_i32_2 = arith.constant 0 : i32
    return %c0_i32, %c0_i32_0, %c0_i32_1 : i32, i32, i32
  }
  func.func @transform_13(%arg0: i32) -> (i32, i32, i32) {
    %c0_i32 = arith.constant 0 : i32
    %c0_i32_0 = arith.constant 0 : i32
    %c0_i32_1 = arith.constant 0 : i32
    %c0_i32_2 = arith.constant 0 : i32
    return %c0_i32, %c0_i32_0, %c0_i32_1 : i32, i32, i32
  }
  func.func @transform_14(%arg0: i32) -> (i32, i32, i32) {
    %c0_i32 = arith.constant 0 : i32
    %c0_i32_0 = arith.constant 0 : i32
    %c0_i32_1 = arith.constant 0 : i32
    %c0_i32_2 = arith.constant 0 : i32
    return %c0_i32, %c0_i32_0, %c0_i32_1 : i32, i32, i32
  }
  func.func @transform_15(%arg0: i32) -> (i32, i32, i32) {
    %c0_i32 = arith.constant 0 : i32
    %c0_i32_0 = arith.constant 0 : i32
    %c0_i32_1 = arith.constant 0 : i32
    %c0_i32_2 = arith.constant 0 : i32
    return %c0_i32, %c0_i32_0, %c0_i32_1 : i32, i32, i32
  }
  func.func @transform_16(%arg0: i32) -> (i32, i32, i32) {
    %c0_i32 = arith.constant 0 : i32
    %c0_i32_0 = arith.constant 0 : i32
    %c0_i32_1 = arith.constant 0 : i32
    %c0_i32_2 = arith.constant 0 : i32
    return %c0_i32, %c0_i32_0, %c0_i32_1 : i32, i32, i32
  }
  func.func @transform_17(%arg0: i32) -> (i32, i32, i32) {
    %c0_i32 = arith.constant 0 : i32
    %c0_i32_0 = arith.constant 0 : i32
    %c0_i32_1 = arith.constant 0 : i32
    %c0_i32_2 = arith.constant 0 : i32
    return %c0_i32, %c0_i32_0, %c0_i32_1 : i32, i32, i32
  }
  func.func @transform_18(%arg0: i32) -> (i32, i32, i32) {
    %c0_i32 = arith.constant 0 : i32
    %c0_i32_0 = arith.constant 0 : i32
    %c0_i32_1 = arith.constant 0 : i32
    %c0_i32_2 = arith.constant 0 : i32
    return %c0_i32, %c0_i32_0, %c0_i32_1 : i32, i32, i32
  }
  func.func @transform_19(%arg0: i32) -> (i32, i32, i32) {
    %c0_i32 = arith.constant 0 : i32
    %c0_i32_0 = arith.constant 0 : i32
    %c0_i32_1 = arith.constant 0 : i32
    %c0_i32_2 = arith.constant 0 : i32
    return %c0_i32, %c0_i32_0, %c0_i32_1 : i32, i32, i32
  }
  func.func @transform_20(%arg0: i32) -> (i32, i32, i32) {
    %c0_i32 = arith.constant 0 : i32
    %c0_i32_0 = arith.constant 0 : i32
    %c0_i32_1 = arith.constant 0 : i32
    %c0_i32_2 = arith.constant 0 : i32
    return %c0_i32, %c0_i32_0, %c0_i32_1 : i32, i32, i32
  }
  func.func @transform_21(%arg0: i32) -> (i32, i32) {
    %c0_i32 = arith.constant 0 : i32
    %c0_i32_0 = arith.constant 0 : i32
    %c0_i32_1 = arith.constant 0 : i32
    return %c0_i32, %c0_i32_0 : i32, i32
  }
  func.func @transform_22(%arg0: i32) -> (i32, i32) {
    %c0_i32 = arith.constant 0 : i32
    %c0_i32_0 = arith.constant 0 : i32
    %c0_i32_1 = arith.constant 0 : i32
    return %c0_i32, %c0_i32_0 : i32, i32
  }
  func.func @transform_23(%arg0: i32) -> (i32, i32) {
    %c0_i32 = arith.constant 0 : i32
    %c0_i32_0 = arith.constant 0 : i32
    %c0_i32_1 = arith.constant 0 : i32
    return %c0_i32, %c0_i32_0 : i32, i32
  }
  func.func @transform_24(%arg0: i32) -> (i32, i32) {
    %c0_i32 = arith.constant 0 : i32
    %c0_i32_0 = arith.constant 0 : i32
    %c0_i32_1 = arith.constant 0 : i32
    return %c0_i32, %c0_i32_0 : i32, i32
  }
  func.func @transform_25(%arg0: i32) -> (i32, i32) {
    %c0_i32 = arith.constant 0 : i32
    %c0_i32_0 = arith.constant 0 : i32
    %c0_i32_1 = arith.constant 0 : i32
    return %c0_i32, %c0_i32_0 : i32, i32
  }
  func.func @transform_26(%arg0: i32) -> (i32, i32) {
    %c0_i32 = arith.constant 0 : i32
    %c0_i32_0 = arith.constant 0 : i32
    %c0_i32_1 = arith.constant 0 : i32
    return %c0_i32, %c0_i32_0 : i32, i32
  }
  func.func @transform_27(%arg0: i32) -> (i32, i32) {
    %c0_i32 = arith.constant 0 : i32
    %c0_i32_0 = arith.constant 0 : i32
    %c0_i32_1 = arith.constant 0 : i32
    return %c0_i32, %c0_i32_0 : i32, i32
  }
  func.func @transform_28(%arg0: i32) -> (i32, i32) {
    %c0_i32 = arith.constant 0 : i32
    %c0_i32_0 = arith.constant 0 : i32
    %c0_i32_1 = arith.constant 0 : i32
    return %c0_i32, %c0_i32_0 : i32, i32
  }
  func.func @transform_29(%arg0: i32) -> (i32, i32) {
    %c0_i32 = arith.constant 0 : i32
    %c0_i32_0 = arith.constant 0 : i32
    %c0_i32_1 = arith.constant 0 : i32
    return %c0_i32, %c0_i32_0 : i32, i32
  }
  func.func @transform_30(%arg0: i32) -> (i32, i32) {
    %c0_i32 = arith.constant 0 : i32
    %c0_i32_0 = arith.constant 0 : i32
    %c0_i32_1 = arith.constant 0 : i32
    return %c0_i32, %c0_i32_0 : i32, i32
  }
  func.func @transform_31(%arg0: i32) -> (i32, i32) {
    %c0_i32 = arith.constant 0 : i32
    %c0_i32_0 = arith.constant 0 : i32
    %c0_i32_1 = arith.constant 0 : i32
    return %c0_i32, %c0_i32_0 : i32, i32
  }
  func.func @transform_32(%arg0: i32) -> (i32, i32) {
    %c0_i32 = arith.constant 0 : i32
    %c0_i32_0 = arith.constant 0 : i32
    %c0_i32_1 = arith.constant 0 : i32
    return %c0_i32, %c0_i32_0 : i32, i32
  }
}

</mosaic_0001>

<bundles_post_ra>
// kernel: classifier_forward.1
= control target key start
LH: loop header
LB: loop body
LE: loop exit
PB: predicated region body
PF: predicated region fallthrough
CT: control target
= control target key end

     0   :  { %s1774_s6 = smov 1   ;;  %s1775_s10 = smov 2   ;;  %s2233_s0 = inlined_call_operand.smem [shape: u32[33], index: -1, kind: input, shape index: {}] }
   0x1   :  { %s1827_s5 = sld [smem:[%s2233_s0]]   ;;  %s1776_s14 = smov 3  }
   0x2   :  { %s1832_s9 = sld [smem:[%s2233_s0 + %s1774_s6]]   ;;  %s1777_s18 = smov 4  }
   0x3   :  { %s1837_s13 = sld [smem:[%s2233_s0 + %s1775_s10]]   ;;  %s1778_s22 = smov 5  }
   0x4   :  { %s1842_s17 = sld [smem:[%s2233_s0 + %s1776_s14]]   ;;  %s1779_s26 = smov 6  }
   0x5   :  { %s1847_s21 = sld [smem:[%s2233_s0 + %s1777_s18]]   ;;  %s1780_s30 = smov 7  }
   0x6   :  { %s1852_s25 = sld [smem:[%s2233_s0 + %s1778_s22]]   ;;  %s1781_s4 = smov 8  }
   0x7   :  { %s1857_s29 = sld [smem:[%s2233_s0 + %s1779_s26]]   ;;  %s1782_s10 = smov 9  }
   0x8   :  { %s1862_s3 = sld [smem:[%s2233_s0 + %s1780_s30]]   ;;  %s1783_s15 = smov 10  }
   0x9   :  { %s1867_s8 = sld [smem:[%s2233_s0 + %s1781_s4]]   ;;  %s1784_s20 = smov 11  }
   0xa   :  { %s1872_s14 = sld [smem:[%s2233_s0 + %s1782_s10]]   ;;  %s1785_s26 = smov 12  }
   0xb   :  { %2244 = sst [smem:[#allocation5_spill]] %s1847_s21  ;;  %s1786_s1 = smov 13  }
   0xc   :  { %s1877_s19 = sld [smem:[%s2233_s0 + %s1783_s15]]   ;;  %s1787_s7 = smov 14  }
   0xd   :  { %s1882_s24 = sld [smem:[%s2233_s0 + %s1784_s20]]   ;;  %s1788_s15 = smov 15  }
   0xe   :  { %s1887_s30 = sld [smem:[%s2233_s0 + %s1785_s26]]   ;;  %s1789_s22 = smov 16  }
   0xf   :  { %s1892_s6 = sld [smem:[%s2233_s0 + %s1786_s1]]   ;;  %s1790_s28 = smov 17  }
  0x10   :  { %s1897_s12 = sld [smem:[%s2233_s0 + %s1787_s7]]   ;;  %s1791_s7 = smov 18  }
  0x11   :  { %s1902_s20 = sld [smem:[%s2233_s0 + %s1788_s15]]   ;;  %s1792_s15 = smov 19  }
  0x12   :  { %s1907_s27 = sld [smem:[%s2233_s0 + %s1789_s22]]   ;;  %s1793_s22 = smov 20  }
  0x13   :  { %s1912_s4 = sld [smem:[%s2233_s0 + %s1790_s28]]   ;;  %s1794_s28 = smov 21  }
  0x14   :  { %s1917_s21 = sld [smem:[%s2233_s0 + %s1791_s7]]   ;;  %s1795_s7 = smov 22  }
  0x15   :  { %2245 = sst [smem:[#allocation6_spill]] %s1892_s6 }
  0x16   :  { %2246 = sst [smem:[#allocation7_spill]] %s1897_s12 }
  0x17   :  { %s1922_s12 = sld [smem:[%s2233_s0 + %s1792_s15]]   ;;  %s1796_s15 = smov 23  }
  0x18   :  { %2247 = sst [smem:[#allocation8_spill]] %s1907_s27 }
  0x19   :  { %s1927_s27 = sld [smem:[%s2233_s0 + %s1793_s22]]   ;;  %s1797_s22 = smov 24  }
  0x1a   :  { %2248 = sst [smem:[#allocation9_spill]] %s1917_s21 }
  0x1b   :  { %s1932_s6 = sld [smem:[%s2233_s0 + %s1794_s28]]   ;;  %s1798_s28 = smov 25  }
  0x1c   :  { %s1937_s21 = sld [smem:[%s2233_s0 + %s1795_s7]]   ;;  %s1799_s7 = smov 26  }
  0x1d   :  { %2249 = sst [smem:[#allocation10_spill]] %s1922_s12 }
  0x1e   :  { %s1942_s12 = sld [smem:[%s2233_s0 + %s1796_s15]]   ;;  %s1800_s15 = smov 27  }
  0x1f   :  { %2250 = sst [smem:[#allocation11_spill]] %s1927_s27 }
  0x20   :  { %s1947_s27 = sld [smem:[%s2233_s0 + %s1797_s22]]   ;;  %s1801_s22 = smov 28  }
  0x21   :  { %2251 = sst [smem:[#allocation12_spill]] %s1932_s6 }
  0x22   :  { %2252 = sst [smem:[#allocation13_spill]] %s1937_s21 }
  0x23   :  { %s1952_s6 = sld [smem:[%s2233_s0 + %s1798_s28]]   ;;  %s1802_s28 = smov 29  }
  0x24   :  { %2253 = sst [smem:[#allocation14_spill]] %s1942_s12 }
  0x25   :  { %s1957_s21 = sld [smem:[%s2233_s0 + %s1799_s7]]   ;;  %s1803_s7 = smov 30  }
  0x26   :  { %2254 = sst [smem:[#allocation15_spill]] %s1947_s27 }
  0x27   :  { %s1962_s12 = sld [smem:[%s2233_s0 + %s1800_s15]]   ;;  %s1804_s15 = smov 31  }
  0x28   :  { %s1967_s27 = sld [smem:[%s2233_s0 + %s1801_s22]]   ;;  %s1805_s22 = smov 32  }
  0x29   :  { %2255 = sst [smem:[#allocation16_spill]] %s1952_s6 }
  0x2a   :  { %s1972_s6 = sld [smem:[%s2233_s0 + %s1802_s28]]  }
  0x2b   :  { %2256 = sst [smem:[#allocation17_spill]] %s1957_s21 }
  0x2c   :  { %s1977_s21 = sld [smem:[%s2233_s0 + %s1803_s7]]  }
  0x2d   :  { %2257 = sst [smem:[#allocation18_spill]] %s1962_s12 }
  0x2e   :  { %2258 = sst [smem:[#allocation19_spill]] %s1967_s27 }
  0x2f   :  { %s1982_s12 = sld [smem:[%s2233_s0 + %s1804_s15]]  }
  0x30   :  { %s1987_s27 = sld [smem:[%s2233_s0 + %s1805_s22]]  }
  0x31   :  { %v135_v0 = vld [vmem:[%s1832_s9] sm:$0xff]  ;;  %v137_v1 = vlaneseq  ;;  %vm143_vm0 = vcmask 64512   ;;  %v1806_v3 = vmov 0   ;;  %v1807_v6 = vmov 0.0  }
  0x32   :  { %v136_v2 = vmax.f32 %v135_v0, 0.0  ;;  %1645 = vset.pattern.permute.xlu0 %v1806_v3  ;;  %1647 = vset.pattern.permute.xlu1 %v1806_v3 }
  0x33   :  { %v138_v4 = vshrl.u32 %v137_v1, 7  ;;  %v140_v5 = vand.u32 127, %v137_v1  ;;  %1648 = vset.pattern.permute.xlu2 %v1806_v3 }
  0x34   :  { %162 = vmatpush.msra.mxu0 %v136_v2 }
  0x35   :  { %vm141_vm1 = vcmp.le.s32.totalorder %v140_v5, %v138_v4 }
  0x36   :  { %v142_v7 = vsel %vm141_vm1, 1.0, %v1807_v6 }
  0x37   :  { %1518 = vmatmul.msk.f32.vlgmr.msra.gmra.mxu0 %vm143_vm0, %v142_v7 }
  0x38   :  { %70 = vsyncpa [#allocation3], 0  ;;  %s1808_s0 = smov 127   ;;  %vm169_vm2 = vcmask 15360   ;;  %vm167_vm3 = vcmp.eq.s32.totalorder %v138_v4, %v140_v5  ;;  %v1809_v10 = vmov 1   ;;  %v219_v11 = vld [vmem:[%s1852_s25 + $0x18] sm:$0xff] }
  0x39   :  { %211 = vrot.lane.b32.xlu1 %v135_v0, %s1808_s0  ;;  %v168_v9 = vsel %vm167_vm3, 1.0, %v1807_v6  ;;  %269 = vmatpush.msra.mxu3 %v219_v11  ;;  %v218_v12 = vld [vmem:[%s1852_s25 + $0x10] sm:$0xff]  ;;  %v217_v13 = vld [vmem:[%s1852_s25 + $0x8] sm:$0xff]  ;;  %v220_v14 = vld [vmem:[%s1862_s3] sm:$0xff]  ;;  %vm250_vm4 = vcmask 261120   ;;  %s1811_s9 = smov 96  }
  0x3a   :  { %v216_v15 = vld [vmem:[%s1852_s25] sm:$0xff]  ;;  %242 = vmatpush.msra.mxu2 %v220_v14  ;;  %v215_v17 = vld [vmem:[%s1827_s5 + $0x8] sm:$0xff]  ;;  %v314_v28 = vld [vmem:[%s1872_s14 + $0x18] sm:$0xff]  ;;  %vm354_vm5 = vcmask 130048   ;;  %s1813_s25 = smov 8   ;;  %s1816_s3 = smov 16  }
  0x3b   :  { %270 = vmatpush.msra.mxu3 %v218_v12  ;;  %v214_v16 = vld [vmem:[%s1827_s5] sm:$0xff]  ;;  %337 = vmatpush.msrb.mxu0 %v314_v28  ;;  %v313_v29 = vld [vmem:[%s1872_s14 + $0x10] sm:$0xff]  ;;  %v312_v30 = vld [vmem:[%s1872_s14 + $0x8] sm:$0xff]  ;;  %s1810_s5 = smov 80   ;;  %s2260_s28 = sld [smem:[#allocation7_spill]]  ;;  %vm710_vm13 = vcmask 523264  }
  0x3c   :  { %v311_v31 = vld [vmem:[%s1872_s14] sm:$0xff]  ;;  %s2261_s1 = sld [smem:[#allocation8_spill]]  ;;  %s1477_s18 = sshll.u32 %s1987_s27, 4  ;;  %s1478_s18 = int_to_ptr.hbm [resolvable:$true] %s1477_s18 }
  0x3d   :  { %271 = vmatpush.msra.mxu3 %v217_v13  ;;  %338 = vmatpush.msrb.mxu0 %v313_v29  ;;  %v1670_v32 = vld [vmem:[%s1857_s29] ss:$0 sm:$0xff]  ;;  %s1815_s29 = smov 64   ;;  %s2262_s2 = sld [smem:[#allocation9_spill]] }
  0x3e   :  { %v1671_v38 = vld [vmem:[%s1867_s8] ss:$0 sm:$0xff]  ;;  %s2259_s8 = sld [smem:[#allocation6_spill]]  ;;  %s1760_s22 = sshra.s32 %s1478_s18, 4  ;;  %s1761_s22 = int_to_ptr.hbm [resolvable:$true] %s1760_s22 }
  0x3f   :  { %272 = vmatpush.msra.mxu3 %v216_v15  ;;  %339 = vmatpush.msrb.mxu0 %v312_v30  ;;  %v213_v40 = vld [vmem:[%s1842_s17] sm:$0xff]  ;;  %s1812_s17 = smov 112   ;;  %s2263_s7 = sld [smem:[#allocation10_spill]] }
  0x40   :  { %1523 = vmatmul.msk.f32.vlgmr.msra.gmra.mxu3 %vm250_vm4, %v214_v16  ;;  %v1672_v51 = vld [vmem:[%s1877_s19] ss:$0 sm:$0xff]  ;;  %s2264_s10 = sld [smem:[#allocation11_spill]]  ;;  %s1764_s23 = scalar_lea.hbm %s1987_s27, 2 }
  0x41   :  { %282 = vperm.xlu1 %1647, %v135_v0   ;;  %340 = vmatpush.msrb.mxu0 %v311_v31  ;;  %v304_v57 = vld [vmem:[%s1837_s13] sm:$0xff]  ;;  %s1814_s13 = smov 48   ;;  %s2271_s11 = sld [smem:[#allocation16_spill]] }
  0x42   :  { %v2034_v63 = vsel %vm143_vm0, %v304_v57, -inf  ;;  %s2272_s15 = sld [smem:[#allocation17_spill]]  ;;  %p1765_p1 = scmp.lt.s32.totalorder %s1761_s22, %s1987_s27 }
  0x43   :  { %s2273_s16 = sld [smem:[#allocation18_spill]] }
  0x48   :  { %1524 = vmatmul.msk.f32.gmra.mxu3 %vm250_vm4, %v215_v17 }
  0xab   :  { %v212_v18 = vpop.permute.xlu1 %211 }
  0xac   :  { %286 = vperm.xlu2 %1648, %v212_v18  }
  0xb3   :  { %v283_v34 = vpop.permute.xlu1 %282 }
  0xb4   :  { %v164_v8 = vpop.f32.mrf.mxu0  ;;  %v292_v35 = vmul.f32 %v1670_v32, %v283_v34 }
  0xb5   :  { %197 = vperm.xlu0 %1645, %v164_v8   ;;  %1519 = vmatpush.xpose.msk.msra.mxu1 %vm169_vm2, %v164_v8 }
  0xb8   :  { %1520 = vmatmul.msk.f32.vlgmr.msra.gmra.mxu1 %vm169_vm2, %v168_v9 }
  0xbd   :  { %1646 = vset.pattern.permute.xlu0 %v1809_v10 }
  0xbe   :  { %204 = vperm.xlu0 %1646, %v164_v8  }
  0xc3   :  { %v274_v33 = vpop.f32.mrf.mxu3 }
  0xc6   :  { %1669 = vset.pattern.permute.xlu0 %v1806_v3 }
  0xcb   :  { %v277_v43 = vpop.f32.mrf.mxu3 }
 0x106   :  { %v287_v41 = vpop.permute.xlu2 %286 }
 0x107   :  { %v293_v45 = vmul.f32 %v1670_v32, %v287_v41 }
 0x127   :  { %v198_v19 = vpop.permute.xlu0 %197 }
 0x130   :  { %v205_v25 = vpop.permute.xlu0 %204 }
 0x135   :  { %v193_v20 = vpop.f32.mrf.mxu1 }
 0x136   :  { %v200_v21 = vperm.slane %v193_v20, 0  ;;  %v207_v23 = vperm.slane %v193_v20, 1 }
 0x138   :  { %v201_v22 = vsub.f32 %v198_v19, %v200_v21  ;;  %v208_v26 = vsub.f32 %v205_v25, %v207_v23 }
 0x13a   :  { %v202_v24 = vand.u32 2147483647, %v201_v22  ;;  %v209_v27 = vand.u32 2147483647, %v208_v26 }
 0x13c   :  { %1521 = vmatmul.msk.f32.vlgmr.msra.gmra.mxu2 %vm143_vm0, %v202_v24 }
 0x144   :  { %1522 = vmatmul.msk.f32.gmra.mxu2 %vm143_vm0, %v209_v27 }
 0x1bf   :  { %v244_v36 = vpop.f32.mrf.mxu2 }
 0x1c0   :  { %v275_v37 = vadd.f32 %v274_v33, %v244_v36 }
 0x1c2   :  { %v294_v39 = vadd.f32 %v292_v35, %v275_v37 }
 0x1c4   :  { %v300_v42 = vadd.f32 %v1671_v38, %v294_v39 }
 0x1c6   :  { %v2009_v44 = vadd.f32 %v300_v42, %v213_v40 }
 0x1c7   :  { %v247_v46 = vpop.f32.mrf.mxu2 }
 0x1c8   :  { %v278_v47 = vadd.f32 %v277_v43, %v247_v46  ;;  %1525 = vmatmul.msk.f32.vlgmr.msrb.gmra.mxu0 %vm250_vm4, %v2009_v44 }
 0x1ca   :  { %v295_v48 = vadd.f32 %v293_v45, %v278_v47 }
 0x1cc   :  { %v301_v49 = vadd.f32 %v1671_v38, %v295_v48 }
 0x1ce   :  { %v2013_v50 = vadd.f32 %v301_v49, %v213_v40 }
 0x1d0   :  { %1526 = vmatmul.msk.f32.gmra.mxu0 %vm250_vm4, %v2013_v50 }
 0x245   :  { %v342_v52 = vpop.f32.mrf.mxu0 }
 0x246   :  { %v343_v53 = vadd.f32 %v1672_v51, %v342_v52 }
 0x248   :  { %451 = vrot.lane.b32.xlu1 %v343_v53, %s1810_s5 }
 0x24d   :  { %v345_v54 = vpop.f32.mrf.mxu0 }
 0x24e   :  { %v346_v55 = vadd.f32 %v1672_v51, %v345_v54 }
 0x250   :  { %352 = vrot.lane.b32.xlu1 %v346_v55, %s1811_s9  ;;  %449 = vrot.lane.b32.xlu0 %v346_v55, %s1812_s17  ;;  %v1649_v18 = vpack.i.bf16 %v343_v53, %v346_v55 }
 0x251   :  { %453 = vrot.lane.b32.xlu2 %v346_v55, %s1810_s5 }
 0x258   :  { %307 = vrot.lane.b32.xlu0 %v304_v57, %s1813_s25 }
 0x259   :  { %447 = vrot.lane.b32.xlu2 %v343_v53, %s1812_s17 }
 0x261   :  { %350 = vrot.lane.b32.xlu2 %v343_v53, %s1811_s9 }
 0x2ab   :  { %v454_v56 = vpop.permute.xlu2 %453 }
 0x2ac   :  { %1533 = vmatpush.xpose.msk.msrb.mxu3 %vm354_vm5, %v454_v56 }
 0x2b3   :  { %v448_v59 = vpop.permute.xlu2 %447 }
 0x2ba   :  { %v452_v58 = vpop.permute.xlu1 %451 }
 0x2bb   :  { %1534 = vmatpush.xpose.msk.msrb.mxu3 %vm354_vm5, %v452_v58  ;;  %v351_v62 = vpop.permute.xlu2 %350 }
 0x2be   :  { %1535 = vmatmul.msk.f32.vlgmr.msrb.gmra.mxu3 %vm354_vm5, %v448_v59 }
 0x2c2   :  { %v353_v60 = vpop.permute.xlu1 %352  ;;  %v450_v61 = vpop.permute.xlu0 %449 }
 0x2c3   :  { %1527 = vmatpush.xpose.msk.msrb.mxu1 %vm354_vm5, %v353_v60 }
 0x2c6   :  { %1536 = vmatmul.msk.f32.gmra.mxu3 %vm354_vm5, %v450_v61  ;;  %v560_v61 = vld [vmem:[%s1882_s24 + $0x18] sm:$0xff] }
 0x2c7   :  { %1528 = vmatpush.xpose.msk.msrb.mxu1 %vm354_vm5, %v351_v62  ;;  %v559_v62 = vld [vmem:[%s1882_s24 + $0x10] sm:$0xff] }
 0x2ca   :  { %1529 = vmatmul.msk.f32.vlgmr.msrb.gmra.mxu1 %vm354_vm5, %v343_v53  ;;  %v308_v4 = vpop.permute.xlu0 %307 }
 0x2cb   :  { %v2039_v8 = vsel %vm143_vm0, -inf, %v308_v4  ;;  %583 = vmatpush.msra.mxu1 %v560_v61 }
 0x2cd   :  { %584 = vmatpush.msra.mxu1 %v559_v62  ;;  %v1675_v62 = vld [vmem:[%s2260_s28] ss:$0 sm:$0xff] }
 0x2d2   :  { %1530 = vmatmul.msk.f32.gmra.mxu1 %vm354_vm5, %v346_v55 }
 0x341   :  { %v480_v0 = vpop.f32.mrf.mxu3 }
 0x342   :  { %v486_v1 = vmul.f32 0.25, %v480_v0  ;;  %v558_v0 = vld [vmem:[%s1882_s24 + $0x8] sm:$0xff] }
 0x343   :  { %585 = vmatpush.msra.mxu1 %v558_v0 }
 0x344   :  { %v488_v2 = vadd.f32 %v486_v1, %v2034_v63  ;;  %v557_v1 = vld [vmem:[%s1882_s24] sm:$0xff] }
 0x345   :  { %586 = vmatpush.msra.mxu1 %v557_v1 }
 0x346   :  { %v490_v3 = vsel %vm354_vm5, %v488_v2, -inf }
 0x347   :  { %491 = vmax.xlane.f32.xlu1 %v490_v3  ;;  %v380_v5 = vpop.f32.mrf.mxu1 }
 0x348   :  { %v386_v6 = vmul.f32 0.25, %v380_v5 }
 0x349   :  { %v483_v7 = vpop.f32.mrf.mxu3 }
 0x34a   :  { %v487_v9 = vmul.f32 0.25, %v483_v7  ;;  %v388_v10 = vadd.f32 %v386_v6, %v2034_v63 }
 0x34c   :  { %v390_v11 = vsel %vm354_vm5, %v388_v10, -inf  ;;  %v489_v12 = vadd.f32 %v487_v9, %v2039_v8  ;;  %v1673_v9 = vld [vmem:[%s1887_s30] ss:$0 sm:$0xff] }
 0x34d   :  { %391 = vmax.xlane.f32.xlu0 %v390_v11 }
 0x34e   :  { %v493_v13 = vsel %vm354_vm5, %v489_v12, -inf }
 0x34f   :  { %494 = vmax.xlane.f32.xlu2 %v493_v13  ;;  %v383_v14 = vpop.f32.mrf.mxu1 }
 0x350   :  { %v387_v15 = vmul.f32 0.25, %v383_v14 }
 0x352   :  { %v389_v16 = vadd.f32 %v387_v15, %v2039_v8 }
 0x354   :  { %v393_v17 = vsel %vm354_vm5, %v389_v16, -inf }
 0x357   :  { %394 = vmax.xlane.f32.xlu2 %v393_v17 }
 0x36f   :  { %1650 = vrot.lane.b32.xlu2 %v1649_v18, %s1814_s13 }
 0x3ba   :  { %v492_v19 = vpop.xlane.xlu1 %491 }
 0x3bb   :  { %v496_v20 = vsub.f32 %v488_v2, %v492_v19 }
 0x3bd   :  { %v498_v21 = vmul.f32 1.442695, %v496_v20 }
 0x3bf   :  { %1694 = vpow2.f32 %v498_v21 }
 0x3c0   :  { %v392_v22 = vpop.xlane.xlu0 %391 }
 0x3c1   :  { %v396_v23 = vsub.f32 %v388_v10, %v392_v22 }
 0x3c2   :  { %v495_v24 = vpop.xlane.xlu2 %494 }
 0x3c3   :  { %v398_v25 = vmul.f32 1.442695, %v396_v23  ;;  %v497_v26 = vsub.f32 %v489_v12, %v495_v24 }
 0x3c5   :  { %v1695_v27 = vpop.eup %1694  ;;  %1696 = vpow2.f32 %v398_v25  ;;  %v500_v28 = vmul.f32 1.442695, %v497_v26 }
 0x3c6   :  { %v502_v29 = vsel %vm354_vm5, %v1695_v27, 0.0 }
 0x3c7   :  { %1698 = vpow2.f32 %v500_v28  ;;  %503 = vadd.xlane.f32.xlu1 %v502_v29 }
 0x3ca   :  { %v395_v30 = vpop.xlane.xlu2 %394 }
 0x3cb   :  { %v1697_v31 = vpop.eup %1696  ;;  %v397_v32 = vsub.f32 %v389_v16, %v395_v30 }
 0x3cc   :  { %v402_v35 = vsel %vm354_vm5, %v1697_v31, 0.0 }
 0x3cd   :  { %v1699_v33 = vpop.eup %1698  ;;  %v400_v34 = vmul.f32 1.442695, %v397_v32 }
 0x3ce   :  { %v505_v36 = vsel %vm354_vm5, %v1699_v33, 0.0 }
 0x3cf   :  { %1700 = vpow2.f32 %v400_v34  ;;  %403 = vadd.xlane.f32.xlu1 %v402_v35  ;;  %506 = vadd.xlane.f32.xlu0 %v505_v36  ;;  %v661_v34 = vld [vmem:[%s1902_s20 + $0x10] sm:$0xff]  ;;  %v660_v35 = vld [vmem:[%s1902_s20 + $0x8] sm:$0xff]  ;;  %v659_v36 = vld [vmem:[%s1902_s20] sm:$0xff] }
 0x3d2   :  { %v1651_v37 = vpop.permute.xlu2 %1650 }
 0x3d3   :  { %v1652_v38 = vunpack.i.l.bf16 %v1651_v37  ;;  %v1653_v40 = vunpack.i.h.bf16 %v1651_v37 }
 0x3d5   :  { %v1701_v39 = vpop.eup %1700  ;;  %538 = vmatpush.msra.mxu0 %v1652_v38 }
 0x3d6   :  { %v405_v41 = vsel %vm354_vm5, %v1701_v39, 0.0 }
 0x3d7   :  { %406 = vadd.xlane.f32.xlu1 %v405_v41  ;;  %539 = vmatpush.msra.mxu0 %v1653_v40  ;;  %v705_v40 = vld [vmem:[%s1912_s4 + $0x38] sm:$0xff]  ;;  %v704_v41 = vld [vmem:[%s1912_s4 + $0x30] sm:$0xff] }
 0x3d8   :  { %725 = vmatpush.msra.mxu3 %v705_v40  ;;  %v1546_v40 = vld [vmem:[%s1872_s14 + $0x28] sm:$0xff] }
 0x3da   :  { %726 = vmatpush.msra.mxu3 %v704_v41  ;;  %v1545_v41 = vld [vmem:[%s1872_s14 + $0x20] sm:$0xff] }
 0x3e3   :  { %1655 = vrot.lane.b32.xlu0 %v1649_v18, %s1815_s29  ;;  %v1817_v18 = vmov 32.0  }
 0x43a   :  { %v504_v42 = vpop.xlane.xlu1 %503 }
 0x43b   :  { %1702 = vrcp.f32 %v504_v42  ;;  %v703_v42 = vld [vmem:[%s1912_s4 + $0x28] sm:$0xff] }
 0x43c   :  { %727 = vmatpush.msra.mxu3 %v703_v42 }
 0x441   :  { %v1703_v43 = vpop.eup %1702 }
 0x442   :  { %v510_v45 = vmul.f32 %v1703_v43, %v1695_v27  ;;  %v507_v46 = vpop.xlane.xlu0 %506  ;;  %v404_v48 = vpop.xlane.xlu1 %403 }
 0x443   :  { %1704 = vrcp.f32 %v507_v46  ;;  %v702_v46 = vld [vmem:[%s1912_s4 + $0x20] sm:$0xff] }
 0x444   :  { %1537 = vmatmul.msk.f32.vlgmr.msra.gmra.mxu0 %vm354_vm5, %v510_v45  ;;  %1706 = vrcp.f32 %v404_v48  ;;  %728 = vmatpush.msra.mxu3 %v702_v46 }
 0x449   :  { %v1705_v47 = vpop.eup %1704 }
 0x44a   :  { %v511_v49 = vmul.f32 %v1705_v47, %v1699_v33  ;;  %v407_v51 = vpop.xlane.xlu1 %406  ;;  %v1707_v53 = vpop.eup %1706  ;;  %v662_v33 = vld [vmem:[%s1902_s20 + $0x18] sm:$0xff] }
 0x44b   :  { %1708 = vrcp.f32 %v407_v51  ;;  %v410_v56 = vmul.f32 %v1707_v53, %v1697_v31 }
 0x44c   :  { %1538 = vmatmul.msk.f32.gmra.mxu0 %vm354_vm5, %v511_v49  ;;  %1710 = vrcp.f32 %v1817_v18  ;;  %v701_v49 = vld [vmem:[%s1912_s4 + $0x18] sm:$0xff] }
 0x44d   :  { %729 = vmatpush.msra.mxu3 %v701_v49 }
 0x451   :  { %v1709_v57 = vpop.eup %1708 }
 0x452   :  { %v411_v58 = vmul.f32 %v1709_v57, %v1701_v39  ;;  %v1711_v19 = vpop.eup %1710 }
 0x453   :  { %v605_v20 = vmul.f32 32.0, %v1711_v19  ;;  %vm609_vm6 = vweird.f32 %v1711_v19 }
 0x455   :  { %v1656_v52 = vpop.permute.xlu0 %1655  ;;  %v606_v21 = vsub.f32 1.0, %v605_v20  ;;  %v1677_v20 = vld [vmem:[%s2262_s2] ss:$0 sm:$0xff] }
 0x456   :  { %v1657_v54 = vunpack.i.l.bf16 %v1656_v52  ;;  %v1658_v55 = vunpack.i.h.bf16 %v1656_v52 }
 0x457   :  { %v607_v22 = vmul.f32 %v1711_v19, %v606_v21 }
 0x458   :  { %438 = vmatpush.msrb.mxu2 %v1657_v54 }
 0x459   :  { %v608_v23 = vadd.f32 %v1711_v19, %v607_v22 }
 0x45a   :  { %439 = vmatpush.msrb.mxu2 %v1658_v55 }
 0x45b   :  { %1531 = vmatmul.msk.f32.vlgmr.msrb.gmra.mxu2 %vm354_vm5, %v410_v56 }
 0x45c   :  { %685 = vmatpush.msra.mxu2 %v662_v33 }
 0x45e   :  { %686 = vmatpush.msra.mxu2 %v661_v34 }
 0x460   :  { %687 = vmatpush.msra.mxu2 %v660_v35 }
 0x462   :  { %688 = vmatpush.msra.mxu2 %v659_v36 }
 0x463   :  { %1532 = vmatmul.msk.f32.gmra.mxu2 %vm354_vm5, %v411_v58  ;;  %v1674_v58 = vld [vmem:[%s2259_s8] ss:$0 sm:$0xff] }
 0x4c1   :  { %v541_v59 = vpop.f32.mrf.mxu0 }
 0x4c2   :  { %549 = vrot.lane.b32.xlu1 %v541_v59, %s1816_s3 }
 0x4c9   :  { %v544_v60 = vpop.f32.mrf.mxu0 }
 0x4ca   :  { %551 = vrot.lane.b32.xlu2 %v544_v60, %s1816_s3 }
 0x4de   :  { %v441_v2 = vpop.f32.mrf.mxu2 }
 0x4e6   :  { %v444_v6 = vpop.f32.mrf.mxu2 }
 0x524   :  { %v552_v5 = vpop.permute.xlu2 %551 }
 0x525   :  { %v556_v7 = vsel %vm354_vm5, %v444_v6, %v552_v5 }
 0x534   :  { %v550_v3 = vpop.permute.xlu1 %549 }
 0x535   :  { %v555_v4 = vsel %vm354_vm5, %v441_v2, %v550_v3 }
 0x536   :  { %1539 = vmatmul.msk.f32.vlgmr.msra.gmra.mxu1 %vm250_vm4, %v555_v4 }
 0x53e   :  { %1540 = vmatmul.msk.f32.gmra.mxu1 %vm250_vm4, %v556_v7 }
 0x5b3   :  { %v588_v10 = vpop.f32.mrf.mxu1 }
 0x5b4   :  { %v589_v11 = vadd.f32 %v1673_v9, %v588_v10  ;;  %v700_v10 = vld [vmem:[%s1912_s4 + $0x10] sm:$0xff] }
 0x5b5   :  { %730 = vmatpush.msra.mxu3 %v700_v10  ;;  %v1680_v10 = vld [vmem:[%s1877_s19 + $0x1] ss:$0 sm:$0xff]  ;;  %s2266_s19 = sld [smem:[#allocation15_spill]] }
 0x5b6   :  { %v594_v12 = vadd.f32 %v589_v11, %v2009_v44  ;;  %v2072_v44 = vsel %vm609_vm6, %v1711_v19, %v608_v23  ;;  %v699_v11 = vld [vmem:[%s1912_s4 + $0x8] sm:$0xff] }
 0x5b7   :  { %731 = vmatpush.msra.mxu3 %v699_v11 }
 0x5b8   :  { %v598_v13 = vsel %vm250_vm4, %v594_v12, 0.0 }
 0x5b9   :  { %599 = vadd.xlane.f32.xlu0 %v598_v13  ;;  %v1676_v13 = vld [vmem:[%s2261_s1] ss:$0 sm:$0xff] }
 0x5bb   :  { %v591_v14 = vpop.f32.mrf.mxu1 }
 0x5bc   :  { %v592_v15 = vadd.f32 %v1673_v9, %v591_v14 }
 0x5be   :  { %v595_v16 = vadd.f32 %v592_v15, %v2013_v50 }
 0x5c0   :  { %v601_v17 = vsel %vm250_vm4, %v595_v16, 0.0 }
 0x5c1   :  { %602 = vadd.xlane.f32.xlu2 %v601_v17 }
 0x62c   :  { %v600_v24 = vpop.xlane.xlu0 %599 }
 0x62d   :  { %v611_v25 = vmul.f32 %v2072_v44, %v600_v24 }
 0x62f   :  { %v613_v50 = vsub.f32 %v594_v12, %v611_v25  ;;  %v698_v12 = vld [vmem:[%s1912_s4] sm:$0xff] }
 0x630   :  { %732 = vmatpush.msra.mxu3 %v698_v12 }
 0x631   :  { %v615_v26 = vmul.f32 %v613_v50, %v613_v50 }
 0x633   :  { %v617_v27 = vsel %vm250_vm4, %v615_v26, 0.0 }
 0x634   :  { %618 = vadd.xlane.f32.xlu1 %v617_v27  ;;  %v603_v28 = vpop.xlane.xlu2 %602 }
 0x635   :  { %v612_v29 = vmul.f32 %v2072_v44, %v603_v28 }
 0x637   :  { %v614_v30 = vsub.f32 %v595_v16, %v612_v29 }
 0x639   :  { %v616_v31 = vmul.f32 %v614_v30, %v614_v30 }
 0x63b   :  { %v620_v32 = vsel %vm250_vm4, %v616_v31, 0.0 }
 0x63c   :  { %621 = vadd.xlane.f32.xlu0 %v620_v32 }
 0x6a7   :  { %v619_v37 = vpop.xlane.xlu1 %618 }
 0x6a8   :  { %v623_v38 = vmul.f32 %v619_v37, %v2072_v44 }
 0x6aa   :  { %v625_v39 = vadd.f32 1e-05, %v623_v38  ;;  %v1548_v38 = vld [vmem:[%s1872_s14 + $0x38] sm:$0xff] }
 0x6ab   :  { %826 = vmatpush.msrb.mxu0 %v1548_v38 }
 0x6ac   :  { %1712 = vrsqrt.f32 %v625_v39  ;;  %vm633_vm8 = vweird.f32 %v625_v39 }
 0x6af   :  { %v622_v43 = vpop.xlane.xlu0 %621 }
 0x6b0   :  { %v624_v45 = vmul.f32 %v622_v43, %v2072_v44 }
 0x6b2   :  { %v1713_v47 = vpop.eup %1712  ;;  %v626_v48 = vadd.f32 1e-05, %v624_v45 }
 0x6b3   :  { %v628_v51 = vmul.f32 %v1713_v47, %v625_v39  ;;  %vm634_vm7 = vweird.f32 %v1713_v47  ;;  %v1547_v39 = vld [vmem:[%s1872_s14 + $0x30] sm:$0xff]  ;;  %s2265_s14 = sld [smem:[#allocation12_spill]] }
 0x6b4   :  { %1714 = vrsqrt.f32 %v626_v48  ;;  %vm635_vm9 = vmor %vm633_vm8, %vm634_vm7  ;;  %vm643_vm11 = vweird.f32 %v626_v48  ;;  %827 = vmatpush.msrb.mxu0 %v1547_v39 }
 0x6b5   :  { %v629_v52 = vmul.f32 %v1713_v47, %v628_v51 }
 0x6b6   :  { %828 = vmatpush.msrb.mxu0 %v1546_v40 }
 0x6b7   :  { %v630_v53 = vmul.f32 0.5, %v629_v52 }
 0x6b8   :  { %829 = vmatpush.msrb.mxu0 %v1545_v41 }
 0x6b9   :  { %v631_v54 = vsub.f32 1.5, %v630_v53 }
 0x6ba   :  { %v1715_v55 = vpop.eup %1714 }
 0x6bb   :  { %v632_v56 = vmul.f32 %v1713_v47, %v631_v54  ;;  %v638_v57 = vmul.f32 %v1715_v55, %v626_v48  ;;  %vm644_vm10 = vweird.f32 %v1715_v55 }
 0x6bc   :  { %vm645_vm12 = vmor %vm643_vm11, %vm644_vm10 }
 0x6bd   :  { %v636_v59 = vsel %vm635_vm9, %v1713_v47, %v632_v56  ;;  %v639_v60 = vmul.f32 %v1715_v55, %v638_v57 }
 0x6be   :  { %v647_v61 = vmul.f32 %v636_v59, %v613_v50 }
 0x6bf   :  { %v640_v0 = vmul.f32 0.5, %v639_v60 }
 0x6c0   :  { %v652_v1 = vmul.f32 %v1674_v58, %v647_v61 }
 0x6c1   :  { %v641_v2 = vsub.f32 1.5, %v640_v0 }
 0x6c2   :  { %v657_v3 = vadd.f32 %v1675_v62, %v652_v1 }
 0x6c3   :  { %v642_v4 = vmul.f32 %v1715_v55, %v641_v2 }
 0x6c4   :  { %1541 = vmatmul.msk.f32.vlgmr.msra.gmra.mxu2 %vm250_vm4, %v657_v3 }
 0x6c5   :  { %v646_v5 = vsel %vm645_vm12, %v1715_v55, %v642_v4  ;;  %vm1336_vm12 = vcmask 1041408  }
 0x6c6   :  { %v648_v6 = vmul.f32 %v646_v5, %v614_v30 }
 0x6c8   :  { %v653_v7 = vmul.f32 %v1674_v58, %v648_v6  ;;  %v1678_v58 = vld [vmem:[%s2263_s7] ss:$0 sm:$0xff] }
 0x6ca   :  { %v658_v9 = vadd.f32 %v1675_v62, %v653_v7  ;;  %v1679_v62 = vld [vmem:[%s2264_s10] ss:$0 sm:$0xff] }
 0x6cc   :  { %1542 = vmatmul.msk.f32.gmra.mxu2 %vm250_vm4, %v658_v9 }
 0x747   :  { %v690_v14 = vpop.f32.mrf.mxu2 }
 0x748   :  { %v691_v15 = vadd.f32 %v1676_v13, %v690_v14 }
 0x74a   :  { %v696_v16 = vmax.f32 %v691_v15, 0.0 }
 0x74c   :  { %1543 = vmatmul.msk.f32.vlgmr.msra.gmra.mxu3 %vm710_vm13, %v696_v16 }
 0x74f   :  { %v693_v17 = vpop.f32.mrf.mxu2 }
 0x750   :  { %v694_v18 = vadd.f32 %v1676_v13, %v693_v17 }
 0x752   :  { %v697_v19 = vmax.f32 %v694_v18, 0.0 }
 0x754   :  { %1544 = vmatmul.msk.f32.gmra.mxu3 %vm710_vm13, %v697_v19 }
 0x7cf   :  { %v734_v21 = vpop.f32.mrf.mxu3 }
 0x7d0   :  { %v735_v22 = vadd.f32 %v1677_v20, %v734_v21 }
 0x7d2   :  { %v740_v23 = vadd.f32 %v735_v22, %v657_v3 }
 0x7d4   :  { %v744_v24 = vsel %vm250_vm4, %v740_v23, 0.0 }
 0x7d5   :  { %745 = vadd.xlane.f32.xlu2 %v744_v24 }
 0x7d7   :  { %v737_v25 = vpop.f32.mrf.mxu3 }
 0x7d8   :  { %v738_v50 = vadd.f32 %v1677_v20, %v737_v25 }
 0x7da   :  { %v741_v26 = vadd.f32 %v738_v50, %v658_v9 }
 0x7dc   :  { %v747_v27 = vsel %vm250_vm4, %v741_v26, 0.0 }
 0x7dd   :  { %748 = vadd.xlane.f32.xlu0 %v747_v27 }
 0x848   :  { %v746_v28 = vpop.xlane.xlu2 %745 }
 0x849   :  { %v750_v29 = vmul.f32 %v746_v28, %v2072_v44 }
 0x84b   :  { %v752_v30 = vsub.f32 %v740_v23, %v750_v29 }
 0x84d   :  { %v754_v31 = vmul.f32 %v752_v30, %v752_v30 }
 0x84f   :  { %v756_v32 = vsel %vm250_vm4, %v754_v31, 0.0 }
 0x850   :  { %v749_v33 = vpop.xlane.xlu0 %748  ;;  %757 = vadd.xlane.f32.xlu2 %v756_v32 }
 0x851   :  { %v751_v34 = vmul.f32 %v749_v33, %v2072_v44 }
 0x853   :  { %v753_v35 = vsub.f32 %v741_v26, %v751_v34 }
 0x855   :  { %v755_v36 = vmul.f32 %v753_v35, %v753_v35 }
 0x857   :  { %v759_v37 = vsel %vm250_vm4, %v755_v36, 0.0 }
 0x858   :  { %760 = vadd.xlane.f32.xlu1 %v759_v37 }
 0x8c3   :  { %v758_v42 = vpop.xlane.xlu2 %757 }
 0x8c4   :  { %v762_v43 = vmul.f32 %v758_v42, %v2072_v44 }
 0x8c6   :  { %v764_v45 = vadd.f32 1e-05, %v762_v43 }
 0x8c8   :  { %1716 = vrsqrt.f32 %v764_v45  ;;  %vm772_vm15 = vweird.f32 %v764_v45 }
 0x8cb   :  { %v761_v46 = vpop.xlane.xlu1 %760 }
 0x8cc   :  { %v763_v47 = vmul.f32 %v761_v46, %v2072_v44 }
 0x8ce   :  { %v1717_v48 = vpop.eup %1716  ;;  %v765_v49 = vadd.f32 1e-05, %v763_v47 }
 0x8cf   :  { %v767_v51 = vmul.f32 %v1717_v48, %v764_v45  ;;  %vm773_vm14 = vweird.f32 %v1717_v48 }
 0x8d0   :  { %1718 = vrsqrt.f32 %v765_v49  ;;  %vm774_vm0 = vmor %vm772_vm15, %vm773_vm14  ;;  %vm782_vm2 = vweird.f32 %v765_v49 }
 0x8d1   :  { %v768_v52 = vmul.f32 %v1717_v48, %v767_v51 }
 0x8d3   :  { %v769_v53 = vmul.f32 0.5, %v768_v52 }
 0x8d5   :  { %v770_v54 = vsub.f32 1.5, %v769_v53 }
 0x8d6   :  { %v1719_v55 = vpop.eup %1718 }
 0x8d7   :  { %v771_v56 = vmul.f32 %v1717_v48, %v770_v54  ;;  %v777_v57 = vmul.f32 %v1719_v55, %v765_v49  ;;  %vm783_vm1 = vweird.f32 %v1719_v55 }
 0x8d8   :  { %vm784_vm3 = vmor %vm782_vm2, %vm783_vm1 }
 0x8d9   :  { %v775_v59 = vsel %vm774_vm0, %v1717_v48, %v771_v56  ;;  %v778_v60 = vmul.f32 %v1719_v55, %v777_v57 }
 0x8da   :  { %v786_v61 = vmul.f32 %v775_v59, %v752_v30 }
 0x8db   :  { %v779_v0 = vmul.f32 0.5, %v778_v60 }
 0x8dc   :  { %v791_v1 = vmul.f32 %v1678_v58, %v786_v61 }
 0x8dd   :  { %v780_v2 = vsub.f32 1.5, %v779_v0 }
 0x8de   :  { %v2114_v3 = vadd.f32 %v1679_v62, %v791_v1 }
 0x8df   :  { %v781_v4 = vmul.f32 %v1719_v55, %v780_v2 }
 0x8e0   :  { %1550 = vmatmul.msk.f32.vlgmr.msrb.gmra.mxu0 %vm250_vm4, %v2114_v3 }
 0x8e1   :  { %v785_v5 = vsel %vm784_vm3, %v1719_v55, %v781_v4  ;;  %vm1294_vm3 = vcmask 1040384  }
 0x8e2   :  { %v787_v6 = vmul.f32 %v785_v5, %v753_v35 }
 0x8e4   :  { %v792_v7 = vmul.f32 %v1678_v58, %v787_v6 }
 0x8e6   :  { %v2118_v9 = vadd.f32 %v1679_v62, %v792_v7 }
 0x8e8   :  { %1551 = vmatmul.msk.f32.gmra.mxu0 %vm250_vm4, %v2118_v9 }
 0x95d   :  { %v831_v11 = vpop.f32.mrf.mxu0 }
 0x95e   :  { %v832_v12 = vadd.f32 %v1680_v10, %v831_v11 }
 0x960   :  { %935 = vrot.lane.b32.xlu1 %v832_v12, %s1812_s17  ;;  %939 = vrot.lane.b32.xlu2 %v832_v12, %s1810_s5 }
 0x965   :  { %v834_v13 = vpop.f32.mrf.mxu0 }
 0x966   :  { %v835_v14 = vadd.f32 %v1680_v10, %v834_v13 }
 0x968   :  { %941 = vrot.lane.b32.xlu0 %v835_v14, %s1810_s5  ;;  %841 = vrot.lane.b32.xlu2 %v835_v14, %s1811_s9  ;;  %v1659_v36 = vpack.i.bf16 %v832_v12, %v835_v14 }
 0x970   :  { %937 = vrot.lane.b32.xlu0 %v835_v14, %s1812_s17 }
 0x978   :  { %839 = vrot.lane.b32.xlu0 %v832_v12, %s1811_s9 }
 0x9ba   :  { %v940_v15 = vpop.permute.xlu2 %939 }
 0x9c2   :  { %v842_v16 = vpop.permute.xlu2 %841 }
 0x9c3   :  { %1552 = vmatpush.xpose.msk.msrb.mxu1 %vm354_vm5, %v842_v16 }
 0x9d2   :  { %v936_v18 = vpop.permute.xlu1 %935 }
 0x9da   :  { %v942_v17 = vpop.permute.xlu0 %941 }
 0x9db   :  { %1558 = vmatpush.xpose.msk.msrb.mxu3 %vm354_vm5, %v942_v17  ;;  %v1567_v17 = vld [vmem:[%s1882_s24 + $0x38] sm:$0xff] }
 0x9df   :  { %1559 = vmatpush.xpose.msk.msrb.mxu3 %vm354_vm5, %v940_v15 }
 0x9e2   :  { %v938_v19 = vpop.permute.xlu0 %937  ;;  %1560 = vmatmul.msk.f32.vlgmr.msrb.gmra.mxu3 %vm354_vm5, %v936_v18  ;;  %v1566_v18 = vld [vmem:[%s1882_s24 + $0x30] sm:$0xff] }
 0x9ea   :  { %v840_v20 = vpop.permute.xlu0 %839  ;;  %1561 = vmatmul.msk.f32.gmra.mxu3 %vm354_vm5, %v938_v19  ;;  %v1565_v19 = vld [vmem:[%s1882_s24 + $0x28] sm:$0xff] }
 0x9eb   :  { %1553 = vmatpush.xpose.msk.msrb.mxu1 %vm354_vm5, %v840_v20  ;;  %v1564_v20 = vld [vmem:[%s1882_s24 + $0x20] sm:$0xff]  ;;  %s2267_s24 = sld [smem:[#allocation14_spill]] }
 0x9ee   :  { %1554 = vmatmul.msk.f32.vlgmr.msrb.gmra.mxu1 %vm354_vm5, %v832_v12 }
 0x9ef   :  { %1073 = vmatpush.msra.mxu1 %v1567_v17 }
 0x9f1   :  { %1074 = vmatpush.msra.mxu1 %v1566_v18 }
 0x9f3   :  { %1075 = vmatpush.msra.mxu1 %v1565_v19 }
 0x9f5   :  { %1076 = vmatpush.msra.mxu1 %v1564_v20  ;;  %v1582_v20 = vld [vmem:[%s1912_s4 + $0x50] sm:$0xff] }
 0x9f6   :  { %1555 = vmatmul.msk.f32.gmra.mxu1 %vm354_vm5, %v835_v14 }
 0xa65   :  { %v968_v21 = vpop.f32.mrf.mxu3 }
 0xa66   :  { %v974_v22 = vmul.f32 0.25, %v968_v21 }
 0xa68   :  { %v976_v23 = vadd.f32 %v974_v22, %v2034_v63 }
 0xa6a   :  { %v978_v24 = vsel %vm354_vm5, %v976_v23, -inf }
 0xa6b   :  { %979 = vmax.xlane.f32.xlu1 %v978_v24  ;;  %v868_v25 = vpop.f32.mrf.mxu1 }
 0xa6c   :  { %v874_v50 = vmul.f32 0.25, %v868_v25 }
 0xa6d   :  { %v971_v26 = vpop.f32.mrf.mxu3 }
 0xa6e   :  { %v975_v27 = vmul.f32 0.25, %v971_v26  ;;  %v876_v28 = vadd.f32 %v874_v50, %v2034_v63  ;;  %v1681_v26 = vld [vmem:[%s1887_s30 + $0x1] ss:$0 sm:$0xff]  ;;  %s2268_s30 = sld [smem:[#allocation5_spill]] }
 0xa70   :  { %v878_v29 = vsel %vm354_vm5, %v876_v28, -inf  ;;  %v977_v30 = vadd.f32 %v975_v27, %v2039_v8 }
 0xa71   :  { %879 = vmax.xlane.f32.xlu0 %v878_v29 }
 0xa72   :  { %v981_v31 = vsel %vm354_vm5, %v977_v30, -inf }
 0xa73   :  { %982 = vmax.xlane.f32.xlu2 %v981_v31  ;;  %v871_v32 = vpop.f32.mrf.mxu1 }
 0xa74   :  { %v875_v33 = vmul.f32 0.25, %v871_v32 }
 0xa76   :  { %v877_v34 = vadd.f32 %v875_v33, %v2039_v8 }
 0xa78   :  { %v881_v35 = vsel %vm354_vm5, %v877_v34, -inf }
 0xa79   :  { %882 = vmax.xlane.f32.xlu1 %v881_v35 }
 0xa85   :  { %1660 = vrot.lane.b32.xlu0 %v1659_v36, %s1814_s13 }
 0xade   :  { %v980_v37 = vpop.xlane.xlu1 %979 }
 0xadf   :  { %v984_v63 = vsub.f32 %v976_v23, %v980_v37 }
 0xae1   :  { %v986_v38 = vmul.f32 1.442695, %v984_v63 }
 0xae3   :  { %1720 = vpow2.f32 %v986_v38 }
 0xae4   :  { %v880_v39 = vpop.xlane.xlu0 %879 }
 0xae5   :  { %v884_v40 = vsub.f32 %v876_v28, %v880_v39 }
 0xae6   :  { %v983_v41 = vpop.xlane.xlu2 %982 }
 0xae7   :  { %v886_v42 = vmul.f32 1.442695, %v884_v40  ;;  %v985_v43 = vsub.f32 %v977_v30, %v983_v41 }
 0xae9   :  { %v1721_v45 = vpop.eup %1720  ;;  %1722 = vpow2.f32 %v886_v42  ;;  %v988_v46 = vmul.f32 1.442695, %v985_v43  ;;  %v1576_v42 = vld [vmem:[%s1902_s20 + $0x38] sm:$0xff]  ;;  %v1575_v43 = vld [vmem:[%s1902_s20 + $0x30] sm:$0xff] }
 0xaea   :  { %v990_v8 = vsel %vm354_vm5, %v1721_v45, 0.0 }
 0xaeb   :  { %1724 = vpow2.f32 %v988_v46  ;;  %991 = vadd.xlane.f32.xlu2 %v990_v8  ;;  %v1573_v46 = vld [vmem:[%s1902_s20 + $0x20] sm:$0xff] }
 0xaec   :  { %v883_v47 = vpop.xlane.xlu1 %882 }
 0xaed   :  { %v885_v48 = vsub.f32 %v877_v34, %v883_v47 }
 0xaef   :  { %v1723_v49 = vpop.eup %1722  ;;  %v888_v51 = vmul.f32 1.442695, %v885_v48 }
 0xaf0   :  { %v890_v53 = vsel %vm354_vm5, %v1723_v49, 0.0 }
 0xaf1   :  { %v1725_v52 = vpop.eup %1724  ;;  %1726 = vpow2.f32 %v888_v51  ;;  %v1586_v51 = vld [vmem:[%s1912_s4 + $0x70] sm:$0xff] }
 0xaf2   :  { %v993_v54 = vsel %vm354_vm5, %v1725_v52, 0.0 }
 0xaf3   :  { %891 = vadd.xlane.f32.xlu2 %v890_v53  ;;  %994 = vadd.xlane.f32.xlu1 %v993_v54 }
 0xaf7   :  { %v1727_v55 = vpop.eup %1726  ;;  %v1661_v56 = vpop.permute.xlu0 %1660 }
 0xaf8   :  { %v1662_v57 = vunpack.i.l.bf16 %v1661_v56  ;;  %v1663_v58 = vunpack.i.h.bf16 %v1661_v56  ;;  %v893_v59 = vsel %vm354_vm5, %v1727_v55, 0.0 }
 0xafa   :  { %1026 = vmatpush.msra.mxu0 %v1662_v57 }
 0xafb   :  { %894 = vadd.xlane.f32.xlu2 %v893_v59 }
 0xafc   :  { %1027 = vmatpush.msra.mxu0 %v1663_v58  ;;  %v1583_v58 = vld [vmem:[%s1912_s4 + $0x58] sm:$0xff] }
 0xb0c   :  { %1665 = vrot.lane.b32.xlu1 %v1659_v36, %s1815_s29 }
 0xb5e   :  { %v992_v60 = vpop.xlane.xlu2 %991 }
 0xb5f   :  { %1728 = vrcp.f32 %v992_v60 }
 0xb65   :  { %v1729_v61 = vpop.eup %1728 }
 0xb66   :  { %v998_v62 = vmul.f32 %v1729_v61, %v1721_v45  ;;  %v995_v0 = vpop.xlane.xlu1 %994  ;;  %v892_v4 = vpop.xlane.xlu2 %891  ;;  %v1574_v45 = vld [vmem:[%s1902_s20 + $0x28] sm:$0xff]  ;;  %s2269_s20 = sld [smem:[#allocation13_spill]] }
 0xb67   :  { %1730 = vrcp.f32 %v995_v0 }
 0xb68   :  { %1562 = vmatmul.msk.f32.vlgmr.msra.gmra.mxu0 %vm354_vm5, %v998_v62  ;;  %1732 = vrcp.f32 %v892_v4  ;;  %v1682_v4 = vld [vmem:[%s2259_s8 + $0x1] ss:$0 sm:$0xff] }
 0xb6d   :  { %v1731_v1 = vpop.eup %1730 }
 0xb6e   :  { %v999_v2 = vmul.f32 %v1731_v1, %v1725_v52  ;;  %v895_v5 = vpop.xlane.xlu2 %894  ;;  %v1733_v7 = vpop.eup %1732  ;;  %v1585_v52 = vld [vmem:[%s1912_s4 + $0x68] sm:$0xff] }
 0xb6f   :  { %1734 = vrcp.f32 %v895_v5  ;;  %v898_v12 = vmul.f32 %v1733_v7, %v1723_v49  ;;  %v1587_v49 = vld [vmem:[%s1912_s4 + $0x78] sm:$0xff] }
 0xb70   :  { %1563 = vmatmul.msk.f32.gmra.mxu0 %vm354_vm5, %v999_v2  ;;  %1213 = vmatpush.msra.mxu3 %v1587_v49 }
 0xb72   :  { %1214 = vmatpush.msra.mxu3 %v1586_v51  ;;  %v1297_v51 = vld [vmem:[%s2265_s14 + $0x8] sm:$0xff] }
 0xb74   :  { %1215 = vmatpush.msra.mxu3 %v1585_v52  ;;  %v1296_v52 = vld [vmem:[%s2265_s14] sm:$0xff] }
 0xb75   :  { %v1735_v13 = vpop.eup %1734 }
 0xb76   :  { %v899_v14 = vmul.f32 %v1735_v13, %v1727_v55  ;;  %v1584_v55 = vld [vmem:[%s1912_s4 + $0x60] sm:$0xff] }
 0xb77   :  { %1216 = vmatpush.msra.mxu3 %v1584_v55 }
 0xb79   :  { %1217 = vmatpush.msra.mxu3 %v1583_v58 }
 0xb7b   :  { %1218 = vmatpush.msra.mxu3 %v1582_v20 }
 0xb7e   :  { %v1666_v6 = vpop.permute.xlu1 %1665 }
 0xb7f   :  { %v1667_v10 = vunpack.i.l.bf16 %v1666_v6  ;;  %v1668_v11 = vunpack.i.h.bf16 %v1666_v6 }
 0xb81   :  { %926 = vmatpush.msrb.mxu2 %v1667_v10  ;;  %v1683_v10 = vld [vmem:[%s2260_s28 + $0x1] ss:$0 sm:$0xff] }
 0xb83   :  { %927 = vmatpush.msrb.mxu2 %v1668_v11 }
 0xb84   :  { %1556 = vmatmul.msk.f32.vlgmr.msrb.gmra.mxu2 %vm354_vm5, %v898_v12 }
 0xb85   :  { %1172 = vmatpush.msra.mxu2 %v1576_v42 }
 0xb87   :  { %1173 = vmatpush.msra.mxu2 %v1575_v43 }
 0xb89   :  { %1174 = vmatpush.msra.mxu2 %v1574_v45 }
 0xb8b   :  { %1175 = vmatpush.msra.mxu2 %v1573_v46 }
 0xb8c   :  { %1557 = vmatmul.msk.f32.gmra.mxu2 %vm354_vm5, %v899_v14 }
 0xbe5   :  { %v1029_v15 = vpop.f32.mrf.mxu0 }
 0xbe6   :  { %1037 = vrot.lane.b32.xlu0 %v1029_v15, %s1816_s3 }
 0xbed   :  { %v1032_v16 = vpop.f32.mrf.mxu0 }
 0xbee   :  { %1039 = vrot.lane.b32.xlu2 %v1032_v16, %s1816_s3 }
 0xc07   :  { %v929_v21 = vpop.f32.mrf.mxu2 }
 0xc0f   :  { %v932_v25 = vpop.f32.mrf.mxu2 }
 0xc48   :  { %v1040_v24 = vpop.permute.xlu2 %1039 }
 0xc49   :  { %v1044_v50 = vsel %vm354_vm5, %v932_v25, %v1040_v24 }
 0xc58   :  { %v1038_v22 = vpop.permute.xlu0 %1037 }
 0xc59   :  { %v1043_v23 = vsel %vm354_vm5, %v929_v21, %v1038_v22  ;;  %v1581_v21 = vld [vmem:[%s1912_s4 + $0x48] sm:$0xff]  ;;  %v1580_v22 = vld [vmem:[%s1912_s4 + $0x40] sm:$0xff]  ;;  %s2270_s4 = sld [smem:[#allocation19_spill]] }
 0xc5a   :  { %1569 = vmatmul.msk.f32.vlgmr.msra.gmra.mxu1 %vm250_vm4, %v1043_v23  ;;  %1219 = vmatpush.msra.mxu3 %v1581_v21  ;;  %v1684_v23 = vld [vmem:[%s2261_s1 + $0x1] ss:$0 sm:$0xff]  ;;  %v1328_v21 = vld [vmem:[%s2267_s24 + $0x8] sm:$0x3] }
 0xc5c   :  { %1220 = vmatpush.msra.mxu3 %v1580_v22  ;;  %v1330_v22 = vld [vmem:[%s2266_s19] sm:$0xff] }
 0xc62   :  { %1570 = vmatmul.msk.f32.gmra.mxu1 %vm250_vm4, %v1044_v50 }
 0xcd7   :  { %v1078_v27 = vpop.f32.mrf.mxu1 }
 0xcd8   :  { %v1079_v28 = vadd.f32 %v1681_v26, %v1078_v27 }
 0xcda   :  { %v1084_v29 = vadd.f32 %v1079_v28, %v2114_v3 }
 0xcdc   :  { %v1090_v30 = vsel %vm250_vm4, %v1084_v29, 0.0 }
 0xcdd   :  { %1091 = vadd.xlane.f32.xlu0 %v1090_v30 }
 0xcdf   :  { %v1081_v31 = vpop.f32.mrf.mxu1 }
 0xce0   :  { %v1082_v32 = vadd.f32 %v1681_v26, %v1081_v31 }
 0xce2   :  { %v1085_v33 = vadd.f32 %v1082_v32, %v2118_v9 }
 0xce4   :  { %v1093_v34 = vsel %vm250_vm4, %v1085_v33, 0.0 }
 0xce5   :  { %1094 = vadd.xlane.f32.xlu1 %v1093_v34 }
 0xd50   :  { %v1092_v35 = vpop.xlane.xlu0 %1091 }
 0xd51   :  { %v1096_v36 = vmul.f32 %v1092_v35, %v2072_v44 }
 0xd53   :  { %v1098_v37 = vsub.f32 %v1084_v29, %v1096_v36  ;;  %v1685_v29 = vld [vmem:[%s2262_s2 + $0x1] ss:$0 sm:$0xff] }
 0xd55   :  { %v1100_v63 = vmul.f32 %v1098_v37, %v1098_v37 }
 0xd57   :  { %v1102_v3 = vsel %vm250_vm4, %v1100_v63, 0.0 }
 0xd58   :  { %1103 = vadd.xlane.f32.xlu2 %v1102_v3  ;;  %v1095_v38 = vpop.xlane.xlu1 %1094 }
 0xd59   :  { %v1097_v39 = vmul.f32 %v1095_v38, %v2072_v44 }
 0xd5b   :  { %v1099_v40 = vsub.f32 %v1085_v33, %v1097_v39 }
 0xd5d   :  { %v1101_v9 = vmul.f32 %v1099_v40, %v1099_v40 }
 0xd5f   :  { %v1105_v41 = vsel %vm250_vm4, %v1101_v9, 0.0 }
 0xd60   :  { %1106 = vadd.xlane.f32.xlu0 %v1105_v41 }
 0xdcb   :  { %v1104_v8 = vpop.xlane.xlu2 %1103 }
 0xdcc   :  { %v1108_v47 = vmul.f32 %v1104_v8, %v2072_v44 }
 0xdce   :  { %v1110_v48 = vadd.f32 1e-05, %v1108_v47  ;;  %v1299_v47 = vld [vmem:[%s2265_s14 + $0x18] sm:$0xff] }
 0xdcf   :  { %1319 = vmatpush.msrb.mxu0 %v1299_v47 }
 0xdd0   :  { %1736 = vrsqrt.f32 %v1110_v48  ;;  %vm1118_vm7 = vweird.f32 %v1110_v48 }
 0xdd3   :  { %v1107_v53 = vpop.xlane.xlu0 %1106 }
 0xdd4   :  { %v1109_v54 = vmul.f32 %v1107_v53, %v2072_v44 }
 0xdd6   :  { %v1737_v56 = vpop.eup %1736  ;;  %v1111_v57 = vadd.f32 1e-05, %v1109_v54  ;;  %v1331_v54 = vld [vmem:[%s2266_s19 + $0x8] sm:$0x3] }
 0xdd7   :  { %v1113_v59 = vmul.f32 %v1737_v56, %v1110_v48  ;;  %vm1119_vm6 = vweird.f32 %v1737_v56  ;;  %v1298_v48 = vld [vmem:[%s2265_s14 + $0x10] sm:$0xff]  ;;  %1594 = vmatpush.msk.msrb.mxu1 %vm1336_vm12, %v1331_v54 }
 0xdd8   :  { %1738 = vrsqrt.f32 %v1111_v57  ;;  %vm1120_vm8 = vmor %vm1118_vm7, %vm1119_vm6  ;;  %vm1128_vm10 = vweird.f32 %v1111_v57  ;;  %1320 = vmatpush.msrb.mxu0 %v1298_v48  ;;  %vm1332_vm6 = vcmask 80896  }
 0xdd9   :  { %v1114_v60 = vmul.f32 %v1737_v56, %v1113_v59  ;;  %1355 = vmatpush.msrb.mxu1 %v1330_v22 }
 0xdda   :  { %1321 = vmatpush.msrb.mxu0 %v1297_v51 }
 0xddb   :  { %v1115_v61 = vmul.f32 0.5, %v1114_v60 }
 0xddc   :  { %1322 = vmatpush.msrb.mxu0 %v1296_v52 }
 0xddd   :  { %v1116_v62 = vsub.f32 1.5, %v1115_v61 }
 0xdde   :  { %v1739_v0 = vpop.eup %1738  ;;  %1596 = vmatpush.msk.msra.mxu0 %vm1336_vm12, %v1328_v21 }
 0xddf   :  { %v1117_v1 = vmul.f32 %v1737_v56, %v1116_v62  ;;  %v1123_v2 = vmul.f32 %v1739_v0, %v1111_v57  ;;  %vm1129_vm9 = vweird.f32 %v1739_v0 }
 0xde0   :  { %vm1130_vm11 = vmor %vm1128_vm10, %vm1129_vm9 }
 0xde1   :  { %v1121_v5 = vsel %vm1120_vm8, %v1737_v56, %v1117_v1  ;;  %v1124_v6 = vmul.f32 %v1739_v0, %v1123_v2 }
 0xde2   :  { %v1132_v7 = vmul.f32 %v1121_v5, %v1098_v37  ;;  %v1686_v5 = vld [vmem:[%s2263_s7 + $0x1] ss:$0 sm:$0xff] }
 0xde3   :  { %v1125_v11 = vmul.f32 0.5, %v1124_v6 }
 0xde4   :  { %v1137_v12 = vmul.f32 %v1682_v4, %v1132_v7 }
 0xde5   :  { %v1126_v13 = vsub.f32 1.5, %v1125_v11 }
 0xde6   :  { %v1142_v14 = vadd.f32 %v1683_v10, %v1137_v12  ;;  %v1687_v12 = vld [vmem:[%s2264_s10 + $0x1] ss:$0 sm:$0xff] }
 0xde7   :  { %v1127_v15 = vmul.f32 %v1739_v0, %v1126_v13 }
 0xde8   :  { %1578 = vmatmul.msk.f32.vlgmr.msra.gmra.mxu2 %vm250_vm4, %v1142_v14 }
 0xde9   :  { %v1131_v16 = vsel %vm1130_vm11, %v1739_v0, %v1127_v15 }
 0xdea   :  { %v1133_v17 = vmul.f32 %v1131_v16, %v1099_v40 }
 0xdec   :  { %v1138_v18 = vmul.f32 %v1682_v4, %v1133_v17 }
 0xdee   :  { %v1143_v19 = vadd.f32 %v1683_v10, %v1138_v18 }
 0xdf0   :  { %1579 = vmatmul.msk.f32.gmra.mxu2 %vm250_vm4, %v1143_v19 }
 0xe6b   :  { %v1177_v24 = vpop.f32.mrf.mxu2 }
 0xe6c   :  { %v1178_v25 = vadd.f32 %v1684_v23, %v1177_v24  ;;  %v1329_v24 = vld [vmem:[%s2268_s30] sm:$0x3] }
 0xe6d   :  { %1595 = vmatmul.msk.f32.vlgmr.msrb.gmra.mxu1 %vm1332_vm6, %v1329_v24 }
 0xe6e   :  { %v1183_v50 = vmax.f32 %v1178_v25, 0.0  ;;  %v1688_v25 = vld [vmem:[%s2269_s20] ss:$0 sm:$0xff] }
 0xe70   :  { %1589 = vmatmul.msk.f32.vlgmr.msra.gmra.mxu3 %vm710_vm13, %v1183_v50 }
 0xe73   :  { %v1180_v26 = vpop.f32.mrf.mxu2 }
 0xe74   :  { %v1181_v27 = vadd.f32 %v1684_v23, %v1180_v26  ;;  %v1327_v23 = vld [vmem:[%s2267_s24] sm:$0xff] }
 0xe75   :  { %1381 = vmatpush.msra.mxu0 %v1327_v23 }
 0xe76   :  { %v1184_v28 = vmax.f32 %v1181_v27, 0.0  ;;  %v1403_v27 = vld [vmem:[%s2270_s4 + $0x8] sm:$0xff] }
 0xe77   :  { %1425 = vmatpush.msrb.mxu2 %v1403_v27 }
 0xe78   :  { %1590 = vmatmul.msk.f32.gmra.mxu3 %vm710_vm13, %v1184_v28  ;;  %v1402_v28 = vld [vmem:[%s2270_s4] sm:$0xff] }
 0xe79   :  { %1426 = vmatpush.msrb.mxu2 %v1402_v28 }
 0xef3   :  { %v1222_v30 = vpop.f32.mrf.mxu3 }
 0xef4   :  { %v1223_v31 = vadd.f32 %v1685_v29, %v1222_v30  ;;  %v1689_v30 = vld [vmem:[%s2271_s11] ss:$0 sm:$0xff] }
 0xef6   :  { %v1228_v32 = vadd.f32 %v1223_v31, %v1142_v14 }
 0xef8   :  { %v1234_v33 = vsel %vm250_vm4, %v1228_v32, 0.0 }
 0xef9   :  { %1235 = vadd.xlane.f32.xlu1 %v1234_v33 }
 0xefb   :  { %v1225_v34 = vpop.f32.mrf.mxu3 }
 0xefc   :  { %v1226_v35 = vadd.f32 %v1685_v29, %v1225_v34  ;;  %v1357_v29 = vpop.f32.mrf.mxu1  ;;  %v1690_v34 = vld [vmem:[%s2272_s15] ss:$0 sm:$0xff] }
 0xefe   :  { %v1229_v36 = vadd.f32 %v1226_v35, %v1143_v19 }
 0xf00   :  { %v1237_v37 = vsel %vm250_vm4, %v1229_v36, 0.0 }
 0xf01   :  { %1238 = vadd.xlane.f32.xlu0 %v1237_v37 }
 0xf6c   :  { %v1236_v63 = vpop.xlane.xlu1 %1235 }
 0xf6d   :  { %v1240_v3 = vmul.f32 %v1236_v63, %v2072_v44 }
 0xf6f   :  { %v1242_v38 = vsub.f32 %v1228_v32, %v1240_v3  ;;  %v1435_v3 = vld [vmem:[%s1977_s21 + $0x8] sm:$0xff] }
 0xf70   :  { %1457 = vmatpush.msra.mxu1 %v1435_v3 }
 0xf71   :  { %v1244_v39 = vmul.f32 %v1242_v38, %v1242_v38 }
 0xf73   :  { %v1246_v40 = vsel %vm250_vm4, %v1244_v39, 0.0  ;;  %v1692_v39 = vld [vmem:[%s1972_s6] ss:$0 sm:$0xff] }
 0xf74   :  { %v1239_v9 = vpop.xlane.xlu0 %1238  ;;  %1247 = vadd.xlane.f32.xlu1 %v1246_v40 }
 0xf75   :  { %v1241_v41 = vmul.f32 %v1239_v9, %v2072_v44 }
 0xf77   :  { %v1243_v42 = vsub.f32 %v1229_v36, %v1241_v41  ;;  %v1691_v36 = vld [vmem:[%s2273_s16] ss:$0 sm:$0xff] }
 0xf79   :  { %v1245_v43 = vmul.f32 %v1243_v42, %v1243_v42 }
 0xf7b   :  { %v1249_v45 = vsel %vm250_vm4, %v1245_v43, 0.0 }
 0xf7c   :  { %1250 = vadd.xlane.f32.xlu0 %v1249_v45  ;;  %v1693_v45 = vld [vmem:[%s1982_s12] ss:$0 sm:$0xff]  ;;  %s1762_s12 = scalar_lea.hbm %s1761_s22, 2 }
 0xf7d   :  { %p1763_p0 = scmp.ne.s32.totalorder %s1761_s22, %s1762_s12  ;;  %p1766_p2 = scmp.lt.s32.totalorder %s1764_s23, %s1762_s12 }
 0xf7f   :  { %p1767_p3 = por %p1766_p2, %p1765_p1 }
 0xf81   :  { %p1768_p4 = pnand %p1767_p3, %p1763_p0 }
 0xfe7   :  { %v1248_v46 = vpop.xlane.xlu1 %1247 }
 0xfe8   :  { %v1252_v8 = vmul.f32 %v1248_v46, %v2072_v44 }
 0xfea   :  { %v1254_v49 = vadd.f32 1e-05, %v1252_v8 }
 0xfec   :  { %1740 = vrsqrt.f32 %v1254_v49  ;;  %vm1262_vm14 = vweird.f32 %v1254_v49 }
 0xfef   :  { %v1251_v53 = vpop.xlane.xlu0 %1250 }
 0xff0   :  { %v1253_v55 = vmul.f32 %v1251_v53, %v2072_v44 }
 0xff2   :  { %v1741_v56 = vpop.eup %1740  ;;  %v1255_v57 = vadd.f32 1e-05, %v1253_v55 }
 0xff3   :  { %v1257_v58 = vmul.f32 %v1741_v56, %v1254_v49  ;;  %vm1263_vm13 = vweird.f32 %v1741_v56 }
 0xff4   :  { %1742 = vrsqrt.f32 %v1255_v57  ;;  %vm1264_vm15 = vmor %vm1262_vm14, %vm1263_vm13  ;;  %vm1272_vm1 = vweird.f32 %v1255_v57 }
 0xff5   :  { %v1258_v59 = vmul.f32 %v1741_v56, %v1257_v58 }
 0xff7   :  { %v1259_v60 = vmul.f32 0.5, %v1258_v59 }
 0xff9   :  { %v1260_v61 = vsub.f32 1.5, %v1259_v60 }
 0xffa   :  { %v1743_v62 = vpop.eup %1742 }
 0xffb   :  { %v1261_v0 = vmul.f32 %v1741_v56, %v1260_v61  ;;  %v1267_v1 = vmul.f32 %v1743_v62, %v1255_v57  ;;  %vm1273_vm0 = vweird.f32 %v1743_v62 }
 0xffc   :  { %vm1274_vm2 = vmor %vm1272_vm1, %vm1273_vm0 }
 0xffd   :  { %v1265_v2 = vsel %vm1264_vm15, %v1741_v56, %v1261_v0  ;;  %v1268_v4 = vmul.f32 %v1743_v62, %v1267_v1 }
 0xffe   :  { %v1276_v6 = vmul.f32 %v1265_v2, %v1242_v38  ;;  %v1434_v38 = vld [vmem:[%s1977_s21] sm:$0xff]  ;;  %s1818_s21 = smov [#allocation2]  }
 0xfff   :  { %v1269_v44 = vmul.f32 0.5, %v1268_v4  ;;  %1458 = vmatpush.msra.mxu1 %v1434_v38  ;;  %s1475_s6 = sshll.u32 %s1818_s21, 4  ;;  %s1476_s6 = int_to_ptr.vmem [resolvable:$true] %s1475_s6 }
0x1000   :  { %v1281_v11 = vmul.f32 %v1686_v5, %v1276_v6 }
0x1001   :  { %v1270_v7 = vsub.f32 1.5, %v1269_v44 }
0x1002   :  { %v1286_v16 = vadd.f32 %v1687_v12, %v1281_v11 }
0x1003   :  { %v1271_v10 = vmul.f32 %v1743_v62, %v1270_v7 }
0x1004   :  { %v1289_v18 = vrot.slane %v1286_v16, 7 }
0x1005   :  { %v1275_v13 = vsel %vm1274_vm2, %v1743_v62, %v1271_v10 }
0x1006   :  { %v1277_v14 = vmul.f32 %v1275_v13, %v1243_v42 }
0x1008   :  { %v1282_v15 = vmul.f32 %v1686_v5, %v1277_v14 }
0x100a   :  { %v1287_v17 = vadd.f32 %v1687_v12, %v1282_v15 }
0x100c   :  { %v1292_v19 = vrot.slane %v1287_v17, 6 }
0x100e   :  { %v1295_v20 = vsel %vm1294_vm3, %v1289_v18, %v1292_v19 }
0x100f   :  { %1593 = vmatmul.msk.f32.vlgmr.msrb.gmra.mxu0 %vm250_vm4, %v1295_v20  ;;  %vm1468_vm4 = vcmask 25600  }
0x108c   :  { %v1324_v50 = vpop.f32.mrf.mxu0 }
0x108d   :  { %v1325_v26 = vadd.f32 %v1688_v25, %v1324_v50 }
0x108f   :  { %1597 = vmatmul.msk.f32.vlgmr.msra.gmra.mxu0 %vm1332_vm6, %v1325_v26 }
0x110c   :  { %v1383_v31 = vpop.f32.mrf.mxu0 }
0x110d   :  { %v1384_v32 = vadd.f32 %v1383_v31, %v1357_v29 }
0x110f   :  { %v1390_v33 = vadd.f32 %v1689_v30, %v1384_v32 }
0x1111   :  { %v1391_v35 = vmax.f32 %v1390_v33, 0.0 }
0x1113   :  { %v1396_v37 = vmul.f32 %v1690_v34, %v1391_v35 }
0x1115   :  { %v1401_v63 = vadd.f32 %v1691_v36, %v1396_v37 }
0x1117   :  { %1598 = vmatmul.msk.f32.vlgmr.msrb.gmra.mxu2 %vm354_vm5, %v1401_v63 }
0x119a   :  { %v1428_v40 = vpop.f32.mrf.mxu2 }
0x119b   :  { %v1429_v9 = vadd.f32 %v1692_v39, %v1428_v40 }
0x119d   :  { %v1431_v41 = vmax.f32 %v1429_v9, 0.0 }
0x119f   :  { %v1432_v42 = vmul.f32 %v1690_v34, %v1431_v41 }
0x11a1   :  { %v1433_v43 = vadd.f32 %v1691_v36, %v1432_v42 }
0x11a3   :  { %1599 = vmatmul.msk.f32.vlgmr.msra.gmra.mxu1 %vm354_vm5, %v1433_v43 }
0x1220   :  { %v1460_v46 = vpop.f32.mrf.mxu1 }
0x1221   :  { %v1461_v8 = vadd.f32 %v1693_v45, %v1460_v46 }
0x1223   :  { %v1463_v47 = vsub.f32 0.0, %v1461_v8 }
0x1225   :  { %v1464_v48 = vmul.f32 1.442695, %v1463_v47 }
0x1227   :  { %1744 = vpow2.f32 %v1464_v48 }
0x122d   :  { %v1745_v49 = vpop.eup %1744 }
0x122e   :  { %v1466_v51 = vadd.f32 1.0, %v1745_v49 }
0x1230   :  { %1746 = vrcp.f32 %v1466_v51 }
0x1236   :  { %v1747_v52 = vpop.eup %1746 }
0x1237   :  { %1469 = vst.msk [vmem:[#allocation2] sm:$0x3] %vm1468_vm4, %v1747_v52 }
0x1238   :  { %1771 = shalt.err (!%p1768_p4)
}
0x1239   :  { %1480 = dma.vmem_to_hbm [thread:$0]  %s1476_s6, 32, %s1478_s18, [#allocation3]  }
0x123a   :  { %1772 = dma.done.wait [#allocation3], 32  }
0x123b   :  { %1773 = vsyncadd [#allocation3], 4294967264 }
0x123c   :  { %1485 = vsyncpa [#allocation3], 1 }

</bundles_post_ra>
